<compile_context>
chip_gen: v6e
topology: v6e:2x2x1
jax: 0.10.0
libtpu: 0.0.40
codegen_flags: <defaults>
</compile_context>

<pallas_src>
import math
import functools
import numpy as np
import jax
import jax.numpy as jnp
from jax import lax
from jax.experimental import pallas as pl
from jax.experimental.pallas import tpu as pltpu

EPS = 1e-5


# ---------------------------------------------------------------------------
# Kernel 1: tiled BatchNorm statistics (training mode, biased variance).
#   grid = (ceil(M / tm),)  -- reduction axis, "arbitrary".
#   outputs: mean (1, C) f32, rstd (1, C) f32.
# ---------------------------------------------------------------------------
def _bn_stats_kernel(x_ref, mean_ref, rstd_ref, sum_ref, sq_ref, *, m_total, tm):
    i = pl.program_id(0)

    @pl.when(i == 0)
    def _init():
        sum_ref[...] = jnp.zeros_like(sum_ref)
        sq_ref[...] = jnp.zeros_like(sq_ref)

    x = x_ref[...].astype(jnp.float32)          # stats always accumulated in f32
    if m_total % tm != 0:
        # Ragged final tile: rows past the true end contain unspecified data.
        row = lax.broadcasted_iota(jnp.int32, x.shape, 0) + i * tm
        x = jnp.where(row < m_total, x, 0.0)
    sum_ref[...] += jnp.sum(x, axis=0, keepdims=True)
    sq_ref[...] += jnp.sum(x * x, axis=0, keepdims=True)

    @pl.when(i == pl.num_programs(0) - 1)
    def _finalize():
        inv_m = 1.0 / float(m_total)
        mean = sum_ref[...] * inv_m
        # TODO(synk): E[x^2]-E[x]^2 can cancel for very large / non-centered
        # activations; a shifted (Welford-style) accumulation would be more robust.
        var = jnp.maximum(sq_ref[...] * inv_m - mean * mean, 0.0)   # biased, like torch BN
        mean_ref[...] = mean
        rstd_ref[...] = lax.rsqrt(var + EPS)


def bn_stats(x2d, target_rows=1024):
    M, C = x2d.shape
    tm = M if M <= target_rows else target_rows          # 1024-row tiles, cdiv grid
    kernel = functools.partial(_bn_stats_kernel, m_total=M, tm=tm)
    mean, rstd = pl.pallas_call(
        kernel,
        grid=(pl.cdiv(M, tm),),
        in_specs=[pl.BlockSpec((tm, C), lambda i: (i, 0))],
        out_specs=(pl.BlockSpec((1, C), lambda i: (0, 0)),
                   pl.BlockSpec((1, C), lambda i: (0, 0))),
        out_shape=(jax.ShapeDtypeStruct((1, C), jnp.float32),
                   jax.ShapeDtypeStruct((1, C), jnp.float32)),
        scratch_shapes=[pltpu.VMEM((1, C), jnp.float32),
                        pltpu.VMEM((1, C), jnp.float32)],
        compiler_params=pltpu.CompilerParams(dimension_semantics=("arbitrary",)),
    )(x2d)
    return mean, rstd


# ---------------------------------------------------------------------------
# Kernel 2: fused BN-apply + ReLU + 3x3 conv (+ folded 1x1 residual) per
#           (batch, output-row-tile) grid point.
# ---------------------------------------------------------------------------
def _make_conv_kernel(stride, TR, Wo, Wph, Cin, Cout, equal, span):
    s = stride

    def kernel(*refs):
        if equal:
            ph_ref, rstd_ref, mean_ref, w_ref, o_ref, act_ref, patch_ref = refs
        else:
            ph_ref, rstd_ref, w_ref, o_ref, act_ref, patch_ref = refs

        R0 = pl.multiple_of(pl.program_id(1) * TR, TR)
        rstd = rstd_ref[...].astype(jnp.float32).reshape(1, 1, Cin)
        rstd_b = jnp.broadcast_to(rstd, (span, Wph, Cin))   # hoisted: one broadcast

        # (1) BN scale + ReLU applied exactly once per element, into VMEM scratch.
        for p in range(s * s):
            xp = ph_ref[0, p, pl.ds(R0, span), :, :].astype(jnp.float32)
            act_ref[p] = jnp.maximum(xp * rstd_b, 0.0)

        # (2) in-VMEM im2col: bf16 patch matrix (TR*Wo, 9*Cin [+Cin]).
        for kh in range(3):
            for kw in range(3):
                t = kh * 3 + kw
                p = (kh % s) * s + (kw % s)
                r0, c0 = kh // s, kw // s
                tap = act_ref[p, r0:r0 + TR, c0:c0 + Wo, :]          # (TR, Wo, Cin)
                patch_ref[:, t * Cin:(t + 1) * Cin] = (
                    tap.reshape(TR * Wo, Cin).astype(patch_ref.dtype))

        if not equal:
            # Projection residual = 1x1 strided conv on bn(x) (no ReLU); its operand
            # is appended to the patch matrix so it rides the same MXU matmul.
            pc = (1 % s) * s + (1 % s)
            rc = 1 // s
            xc_c = ph_ref[0, pc, pl.ds(R0 + rc, TR), rc:rc + Wo, :].astype(jnp.float32)
            patch_ref[:, 9 * Cin:10 * Cin] = (
                (xc_c * rstd).reshape(TR * Wo, Cin).astype(patch_ref.dtype))

        # (3) one bf16 MXU matmul, f32 accumulation (K = 9*Cin or 10*Cin).
        acc = jnp.dot(patch_ref[...], w_ref[...], preferred_element_type=jnp.float32)

        if equal:
            # Identity residual = raw x (stride == 1): plain VPU add.
            xin = ph_ref[0, 0, pl.ds(R0 + 1, TR), 1:1 + Wo, :].astype(jnp.float32)
            res = xin + mean_ref[...].astype(jnp.float32).reshape(1, 1, Cin)
            acc = acc + res.reshape(TR * Wo, Cin)

        # TODO(synk): for Cout < 128 this store is not lane-dense (masked vst);
        # packing to a 128-multiple last dim would need an in-kernel relayout.
        o_ref[0] = acc.astype(o_ref.dtype)

    return kernel


def _conv_call(phases, rstd, mean, w_all, *, stride, Ho, Wo, TR, equal, out_dtype):
    N, s2, Hph, Wph, Cin = phases.shape
    KW, Cout = w_all.shape
    RT = Ho // TR
    span = TR + 2 // stride
    kernel = _make_conv_kernel(stride, TR, Wo, Wph, Cin, Cout, equal, span)

    in_arrays = [phases, rstd]
    in_specs = [
        pl.BlockSpec((1, s2, Hph, Wph, Cin), lambda n, r: (n, 0, 0, 0, 0)),
        pl.BlockSpec((1, Cin), lambda n, r: (0, 0)),
    ]
    if equal:
        in_arrays.append(mean)
        in_specs.append(pl.BlockSpec((1, Cin), lambda n, r: (0, 0)))
    in_arrays.append(w_all)
    in_specs.append(pl.BlockSpec((KW, Cout), lambda n, r: (0, 0)))

    scratch = [pltpu.VMEM((s2, span, Wph, Cin), jnp.float32),     # activated planes
               pltpu.VMEM((TR * Wo, KW), jnp.bfloat16)]           # im2col patches

    out_isz = jnp.dtype(out_dtype).itemsize
    per_step = (2 * s2 * Hph * Wph * Cin * phases.dtype.itemsize  # phases (dbl-buffered)
                + 2 * TR * Wo * Cout * out_isz                    # out block (dbl-buffered)
                + KW * Cout * 2 + 2 * Cin * 4                     # weights + stats
                + s2 * span * Wph * Cin * 4                       # act scratch (f32)
                + TR * Wo * KW * 2)                               # patch scratch (bf16)

    cp_kwargs = dict(dimension_semantics=("parallel", "parallel"))
    if per_step > 12 * 1024 * 1024:
        try:
            cap = int(pltpu.get_tpu_info().vmem_capacity_bytes)
        except Exception:
            cap = 64 * 1024 * 1024          # conservative: v7x physical VMEM per core
        cp_kwargs["vmem_limit_bytes"] = int(min(max(2 * per_step, 32 * 1024 * 1024),
                                                int(0.75 * cap)))

    return pl.pallas_call(
        kernel,
        grid=(N, RT),
        in_specs=in_specs,
        out_specs=pl.BlockSpec((1, TR * Wo, Cout), lambda n, r: (n, r, 0)),
        out_shape=jax.ShapeDtypeStruct((N, Ho * Wo, Cout), out_dtype),
        scratch_shapes=scratch,
        compiler_params=pltpu.CompilerParams(**cp_kwargs),
    )(*in_arrays)


def _pick_row_tile(Ho, Wo, row_tile):
    """Output-row tile: ~512 output positions per grid step, divides Ho, keeps the
    out block's second-to-last dim a multiple of 8 (unless it is the full dim)."""
    if row_tile is not None:
        tr = int(row_tile)
        if Ho % tr != 0 or (tr != Ho and (tr * Wo) % 8 != 0):
            raise ValueError("row_tile must divide Ho and give a sublane-aligned tile")
        return tr
    target = max(1, 512 // max(Wo, 1))
    for tr in range(min(target, Ho), 0, -1):
        if Ho % tr == 0 and (tr == Ho or (tr * Wo) % 8 == 0):
            return tr
    return Ho


# ---------------------------------------------------------------------------
# Parameter init (mirrors BasicBlock.__init__ defaults: sigmaW=1, varnet=False,
# gain=calculate_gain('relu')=sqrt(2); conv_res via ConstAvg(const=1) -> 1/in_planes).
# ---------------------------------------------------------------------------
def init_basic_block_params(key, in_planes, out_planes):
    gain = math.sqrt(2.0)
    k = 3 * 3 * out_planes
    std = gain * math.sqrt(1.0 / k)
    w_conv = std * jax.random.normal(key, (out_planes, in_planes, 3, 3), jnp.float32)
    if in_planes == out_planes:
        w_res = None
    else:
        w_res = jnp.full((out_planes, in_planes, 1, 1), 1.0 / in_planes, jnp.float32)
    return w_conv, w_res


# ---------------------------------------------------------------------------
# Forward pass (use_bn=True branch of BasicBlock.forward, droprate=0.0).
# ---------------------------------------------------------------------------
@functools.partial(jax.jit, static_argnames=("stride", "row_tile"))
def basic_block_forward(x_nchw, w_conv, w_res, *, stride, row_tile=None):
    N, Cin, H, W = x_nchw.shape
    Cout = w_conv.shape[0]
    equal = (Cin == Cout)
    if equal and stride != 1:
        raise ValueError("equalInOut path requires stride == 1 (as in the PyTorch module)")
    if not equal and w_res is None:
        raise ValueError("projection path (Cin != Cout) requires w_res")

    out_dtype = x_nchw.dtype
    x = jnp.transpose(x_nchw, (0, 2, 3, 1))                  # NCHW -> NHWC
    mean, rstd = bn_stats(x.reshape(N * H * W, Cin))         # Pallas kernel 1

    Ho = (H + 2 - 3) // stride + 1
    Wo = (W + 2 - 3) // stride + 1
    Hph = Ho + 2 // stride
    Wph = Wo + 2 // stride
    # Center by the mean so zero padding stays exactly zero after the in-kernel BN
    # scale + ReLU; pad by 1; split into stride*stride phase planes so every 3x3
    # tap is a contiguous window.  Stored in bf16 (MXU operand dtype, half HBM).
    xc = (x.astype(jnp.float32) - mean.reshape(1, 1, 1, Cin)).astype(jnp.bfloat16)
    pad_h = stride * Hph - H - 1
    pad_w = stride * Wph - W - 1
    xc_pad = jnp.pad(xc, ((0, 0), (1, pad_h), (1, pad_w), (0, 0)))
    phases = jnp.stack(
        [xc_pad[:, pi::stride, pj::stride, :]
         for pi in range(stride) for pj in range(stride)],
        axis=1)                                              # (N, s*s, Hph, Wph, Cin)

    # 3x3 taps flattened into one (9*Cin, Cout) contraction; the 1x1 projection
    # residual weights are appended so the residual shares the same matmul.
    w9 = jnp.transpose(w_conv, (2, 3, 1, 0)).reshape(9 * Cin, Cout)
    if equal:
        w_all = w9.astype(jnp.bfloat16)
    else:
        wres2 = jnp.transpose(w_res, (2, 3, 1, 0)).reshape(Cin, Cout)
        w_all = jnp.concatenate([w9, wres2], axis=0).astype(jnp.bfloat16)

    TR = _pick_row_tile(Ho, Wo, row_tile)
    out2d = _conv_call(phases, rstd, mean, w_all, stride=stride, Ho=Ho, Wo=Wo,
                       TR=TR, equal=equal, out_dtype=out_dtype)   # Pallas kernel 2
    out = out2d.reshape(N, Ho, Wo, Cout)
    # TODO(synk): when chaining BasicBlocks keep NHWC and drop this boundary transpose.
    return jnp.transpose(out, (0, 3, 1, 2))                  # back to NCHW


# ---------------------------------------------------------------------------
# Pure-JAX reference (for sanity checking the kernels)
# ---------------------------------------------------------------------------
def ref_forward(x, w_conv, w_res, stride):
    mean = jnp.mean(x, axis=(0, 2, 3), keepdims=True)
    var = jnp.mean((x - mean) ** 2, axis=(0, 2, 3), keepdims=True)
    xbn = (x - mean) / jnp.sqrt(var + EPS)
    out = lax.conv_general_dilated(jnp.maximum(xbn, 0.0), w_conv,
                                   (stride, stride), ((1, 1), (1, 1)),
                                   dimension_numbers=('NCHW', 'OIHW', 'NCHW'))
    if w_res is None:
        return x + out
    res = lax.conv_general_dilated(xbn, w_res,
                                   (stride, stride), ((0, 0), (0, 0)),
                                   dimension_numbers=('NCHW', 'OIHW', 'NCHW'))
    return res + out


if __name__ == "__main__":
    key = jax.random.PRNGKey(0)
    kx, kw1, kw2 = jax.random.split(key, 3)
    x = jax.random.normal(kx, (2, 4, 16, 16), jnp.float32)

    # bf16 MXU operands -> looser tolerance than the old all-f32 version.
    RTOL, ATOL = 2e-2, 5e-2

    # Case 1: projection path (in != out, stride 2) -> conv + folded 1x1 conv_res.
    w_conv_a, w_res_a = init_basic_block_params(kw1, 4, 8)
    out_a = jax.block_until_ready(basic_block_forward(x, w_conv_a, w_res_a, stride=2))
    ref_a = ref_forward(x, w_conv_a, w_res_a, 2)
    assert out_a.shape == (2, 8, 8, 8)
    np.testing.assert_allclose(np.asarray(out_a), np.asarray(ref_a), rtol=RTOL, atol=ATOL)

    # Case 2: identity path (in == out, stride 1) -> out = x + conv(relu(bn(x))).
    w_conv_b, w_res_b = init_basic_block_params(kw2, 4, 4)
    out_b = jax.block_until_ready(basic_block_forward(x, w_conv_b, w_res_b, stride=1))
    ref_b = ref_forward(x, w_conv_b, w_res_b, 1)
    assert out_b.shape == (2, 4, 16, 16)
    np.testing.assert_allclose(np.asarray(out_b), np.asarray(ref_b), rtol=RTOL, atol=ATOL)

    # Case 3: same as case 2 but forcing the multi-row-tile grid (grid = (N, 2)).
    out_c = jax.block_until_ready(
        basic_block_forward(x, w_conv_b, w_res_b, stride=1, row_tile=8))
    np.testing.assert_allclose(np.asarray(out_c), np.asarray(ref_b), rtol=RTOL, atol=ATOL)

    print("KERNEL_OK")
</pallas_src>

<mosaic_0001>
module attributes {stable_mosaic.version = 11 : i64} {
  func.func @_bn_stats_kernel(%arg0: i32, %arg1: memref<512x4xf32, #tpu.memory_space<vmem>>, %arg2: memref<1x4xf32, #tpu.memory_space<vmem>>, %arg3: memref<1x4xf32, #tpu.memory_space<vmem>>, %arg4: memref<1x4xf32, #tpu.memory_space<vmem>>, %arg5: memref<1x4xf32, #tpu.memory_space<vmem>>) attributes {dimension_semantics = [#tpu.dimension_semantics<arbitrary>], iteration_bounds = array<i64: 1>, scalar_prefetch = 0 : i64, scratch_operands = 2 : i64, tpu.core_type = #tpu.core_type<tc>, window_params = [{transform_indices = @transform_0, window_bounds = array<i64: 512, 4>}, {pipeline_mode = #tpu.pipeline_mode<synchronous>, transform_indices = @transform_1, window_bounds = array<i64: 1, 4>}, {pipeline_mode = #tpu.pipeline_mode<synchronous>, transform_indices = @transform_2, window_bounds = array<i64: 1, 4>}]} {
    %c0_i32 = arith.constant 0 : i32
    %0 = arith.cmpi eq, %arg0, %c0_i32 : i32
    %1 = arith.extui %0 : i1 to i32
    %c0_i32_0 = arith.constant 0 : i32
    %2 = arith.cmpi ne, %1, %c0_i32_0 : i32
    scf.if %2 {
      %cst_13 = arith.constant 0.000000e+00 : f32
      %18 = vector.broadcast %cst_13 : f32 to vector<1x4xf32>
      %c0_14 = arith.constant 0 : index
      %c0_15 = arith.constant 0 : index
      %19 = vector.load %arg4[%c0_14, %c0_15] : memref<1x4xf32, #tpu.memory_space<vmem>>, vector<1x4xf32>
      tpu.vector_store %arg4[%c0_14, %c0_15], %18 {strides = array<i32>} : memref<1x4xf32, #tpu.memory_space<vmem>>, vector<1x4xf32>,
      %cst_16 = arith.constant 0.000000e+00 : f32
      %20 = vector.broadcast %cst_16 : f32 to vector<1x4xf32>
      %c0_17 = arith.constant 0 : index
      %c0_18 = arith.constant 0 : index
      %21 = vector.load %arg5[%c0_17, %c0_18] : memref<1x4xf32, #tpu.memory_space<vmem>>, vector<1x4xf32>
      tpu.vector_store %arg5[%c0_17, %c0_18], %20 {strides = array<i32>} : memref<1x4xf32, #tpu.memory_space<vmem>>, vector<1x4xf32>,
    } else {
    }
    %c0 = arith.constant 0 : index
    %c0_1 = arith.constant 0 : index
    %3 = vector.load %arg1[%c0, %c0_1] : memref<512x4xf32, #tpu.memory_space<vmem>>, vector<512x4xf32>
    %c0_2 = arith.constant 0 : index
    %c0_3 = arith.constant 0 : index
    %4 = vector.load %arg4[%c0_2, %c0_3] : memref<1x4xf32, #tpu.memory_space<vmem>>, vector<1x4xf32>
    %cst = arith.constant dense<0.000000e+00> : vector<4xf32>
    %5 = vector.multi_reduction <add>, %3, %cst [0] : vector<512x4xf32> to vector<4xf32>
    %6 = vector.shape_cast %5 : vector<4xf32> to vector<1x4xf32>
    %7 = arith.addf %4, %6 : vector<1x4xf32>
    %c0_4 = arith.constant 0 : index
    %c0_5 = arith.constant 0 : index
    %8 = vector.load %arg4[%c0_4, %c0_5] : memref<1x4xf32, #tpu.memory_space<vmem>>, vector<1x4xf32>
    tpu.vector_store %arg4[%c0_4, %c0_5], %7 {strides = array<i32>} : memref<1x4xf32, #tpu.memory_space<vmem>>, vector<1x4xf32>,
    %c0_6 = arith.constant 0 : index
    %c0_7 = arith.constant 0 : index
    %9 = vector.load %arg5[%c0_6, %c0_7] : memref<1x4xf32, #tpu.memory_space<vmem>>, vector<1x4xf32>
    %10 = arith.mulf %3, %3 : vector<512x4xf32>
    %cst_8 = arith.constant dense<0.000000e+00> : vector<4xf32>
    %11 = vector.multi_reduction <add>, %10, %cst_8 [0] : vector<512x4xf32> to vector<4xf32>
    %12 = vector.shape_cast %11 : vector<4xf32> to vector<1x4xf32>
    %13 = arith.addf %9, %12 : vector<1x4xf32>
    %c0_9 = arith.constant 0 : index
    %c0_10 = arith.constant 0 : index
    %14 = vector.load %arg5[%c0_9, %c0_10] : memref<1x4xf32, #tpu.memory_space<vmem>>, vector<1x4xf32>
    tpu.vector_store %arg5[%c0_9, %c0_10], %13 {strides = array<i32>} : memref<1x4xf32, #tpu.memory_space<vmem>>, vector<1x4xf32>,
    %c0_i32_11 = arith.constant 0 : i32
    %15 = arith.cmpi eq, %arg0, %c0_i32_11 : i32
    %16 = arith.extui %15 : i1 to i32
    %c0_i32_12 = arith.constant 0 : i32
    %17 = arith.cmpi ne, %16, %c0_i32_12 : i32
    scf.if %17 {
      %c0_13 = arith.constant 0 : index
      %c0_14 = arith.constant 0 : index
      %18 = vector.load %arg4[%c0_13, %c0_14] : memref<1x4xf32, #tpu.memory_space<vmem>>, vector<1x4xf32>
      %cst_15 = arith.constant 0.001953125 : f32
      %19 = vector.broadcast %cst_15 : f32 to vector<1x4xf32>
      %20 = arith.mulf %18, %19 : vector<1x4xf32>
      %c0_16 = arith.constant 0 : index
      %c0_17 = arith.constant 0 : index
      %21 = vector.load %arg5[%c0_16, %c0_17] : memref<1x4xf32, #tpu.memory_space<vmem>>, vector<1x4xf32>
      %cst_18 = arith.constant 0.001953125 : f32
      %22 = vector.broadcast %cst_18 : f32 to vector<1x4xf32>
      %23 = arith.mulf %21, %22 : vector<1x4xf32>
      %24 = arith.mulf %20, %20 : vector<1x4xf32>
      %25 = arith.subf %23, %24 : vector<1x4xf32>
      %cst_19 = arith.constant 0.000000e+00 : f32
      %26 = vector.broadcast %cst_19 : f32 to vector<1x4xf32>
      %27 = arith.maximumf %25, %26 : vector<1x4xf32>
      %c0_20 = arith.constant 0 : index
      %c0_21 = arith.constant 0 : index
      %28 = vector.load %arg2[%c0_20, %c0_21] : memref<1x4xf32, #tpu.memory_space<vmem>>, vector<1x4xf32>
      tpu.vector_store %arg2[%c0_20, %c0_21], %20 {strides = array<i32>} : memref<1x4xf32, #tpu.memory_space<vmem>>, vector<1x4xf32>,
      %cst_22 = arith.constant 9.99999974E-6 : f32
      %29 = vector.broadcast %cst_22 : f32 to vector<1x4xf32>
      %30 = arith.addf %27, %29 : vector<1x4xf32>
      %31 = math.rsqrt %30 : vector<1x4xf32>
      %c0_23 = arith.constant 0 : index
      %c0_24 = arith.constant 0 : index
      %32 = vector.load %arg3[%c0_23, %c0_24] : memref<1x4xf32, #tpu.memory_space<vmem>>, vector<1x4xf32>
      tpu.vector_store %arg3[%c0_23, %c0_24], %31 {strides = array<i32>} : memref<1x4xf32, #tpu.memory_space<vmem>>, vector<1x4xf32>,
    } else {
    }
    return
  }
  func.func @transform_0(%arg0: i32) -> (i32, i32) {
    %c0_i32 = arith.constant 0 : i32
    %c0_i32_0 = arith.constant 0 : i32
    return %arg0, %c0_i32 : i32, i32
  }
  func.func @transform_1(%arg0: i32) -> (i32, i32) {
    %c0_i32 = arith.constant 0 : i32
    %c0_i32_0 = arith.constant 0 : i32
    %c0_i32_1 = arith.constant 0 : i32
    return %c0_i32, %c0_i32_0 : i32, i32
  }
  func.func @transform_2(%arg0: i32) -> (i32, i32) {
    %c0_i32 = arith.constant 0 : i32
    %c0_i32_0 = arith.constant 0 : i32
    %c0_i32_1 = arith.constant 0 : i32
    return %c0_i32, %c0_i32_0 : i32, i32
  }
}

module attributes {stable_mosaic.version = 11 : i64} {
  func.func @kernel(%arg0: i32, %arg1: i32, %arg2: memref<1x4x9x9x4xbf16, #tpu.memory_space<vmem>>, %arg3: memref<1x4xf32, #tpu.memory_space<vmem>>, %arg4: memref<40x8xbf16, #tpu.memory_space<vmem>>, %arg5: memref<1x64x8xf32, #tpu.memory_space<vmem>>, %arg6: memref<4x9x9x4xf32, #tpu.memory_space<vmem>>, %arg7: memref<64x40xbf16, #tpu.memory_space<vmem>>) attributes {dimension_semantics = [#tpu.dimension_semantics<parallel>, #tpu.dimension_semantics<parallel>], iteration_bounds = array<i64: 2, 1>, scalar_prefetch = 0 : i64, scratch_operands = 2 : i64, tpu.core_type = #tpu.core_type<tc>, window_params = [{transform_indices = @transform_0, window_bounds = array<i64: 1, 4, 9, 9, 4>}, {pipeline_mode = #tpu.pipeline_mode<synchronous>, transform_indices = @transform_1, window_bounds = array<i64: 1, 4>}, {pipeline_mode = #tpu.pipeline_mode<synchronous>, transform_indices = @transform_2, window_bounds = array<i64: 40, 8>}, {transform_indices = @transform_3, window_bounds = array<i64: 1, 64, 8>}]} {
    %c8_i32 = arith.constant 8 : i32
    %0 = arith.muli %arg1, %c8_i32 : i32
    %1 = tpu.assume_multiple %0, 8 : i32
    %c0 = arith.constant 0 : index
    %c0_0 = arith.constant 0 : index
    %2 = vector.load %arg3[%c0, %c0_0] : memref<1x4xf32, #tpu.memory_space<vmem>>, vector<1x4xf32>
    %3 = vector.shape_cast %2 : vector<1x4xf32> to vector<1x1x4xf32>
    %4 = vector.shape_cast %3 : vector<1x1x4xf32> to vector<1x1x4xf32>
    %5 = vector.broadcast %4 : vector<1x1x4xf32> to vector<9x9x4xf32>
    %c0_1 = arith.constant 0 : index
    %c0_2 = arith.constant 0 : index
    %6 = arith.index_cast %1 : i32 to index
    %c0_3 = arith.constant 0 : index
    %c0_4 = arith.constant 0 : index
    %7 = vector.load %arg2[%c0_1, %c0_2, %6, %c0_3, %c0_4] : memref<1x4x9x9x4xbf16, #tpu.memory_space<vmem>>, vector<1x1x9x9x4xbf16>
    %8 = vector.shape_cast %7 : vector<1x1x9x9x4xbf16> to vector<9x9x4xbf16>
    %9 = arith.extf %8 : vector<9x9x4xbf16> to vector<9x9x4xf32>
    %10 = arith.mulf %9, %5 : vector<9x9x4xf32>
    %cst = arith.constant 0.000000e+00 : f32
    %11 = vector.broadcast %cst : f32 to vector<9x9x4xf32>
    %12 = arith.maximumf %10, %11 : vector<9x9x4xf32>
    %c0_5 = arith.constant 0 : index
    %c0_6 = arith.constant 0 : index
    %c0_7 = arith.constant 0 : index
    %c0_8 = arith.constant 0 : index
    %13 = vector.load %arg6[%c0_5, %c0_6, %c0_7, %c0_8] : memref<4x9x9x4xf32, #tpu.memory_space<vmem>>, vector<1x9x9x4xf32>
    %14 = vector.shape_cast %13 : vector<1x9x9x4xf32> to vector<9x9x4xf32>
    %15 = vector.shape_cast %12 : vector<9x9x4xf32> to vector<1x9x9x4xf32>
    tpu.vector_store %arg6[%c0_5, %c0_6, %c0_7, %c0_8], %15 {strides = array<i32>} : memref<4x9x9x4xf32, #tpu.memory_space<vmem>>, vector<1x9x9x4xf32>,
    %c0_9 = arith.constant 0 : index
    %c1 = arith.constant 1 : index
    %16 = arith.index_cast %1 : i32 to index
    %c0_10 = arith.constant 0 : index
    %c0_11 = arith.constant 0 : index
    %17 = vector.load %arg2[%c0_9, %c1, %16, %c0_10, %c0_11] : memref<1x4x9x9x4xbf16, #tpu.memory_space<vmem>>, vector<1x1x9x9x4xbf16>
    %18 = vector.shape_cast %17 : vector<1x1x9x9x4xbf16> to vector<9x9x4xbf16>
    %19 = arith.extf %18 : vector<9x9x4xbf16> to vector<9x9x4xf32>
    %20 = arith.mulf %19, %5 : vector<9x9x4xf32>
    %cst_12 = arith.constant 0.000000e+00 : f32
    %21 = vector.broadcast %cst_12 : f32 to vector<9x9x4xf32>
    %22 = arith.maximumf %20, %21 : vector<9x9x4xf32>
    %c1_13 = arith.constant 1 : index
    %c0_14 = arith.constant 0 : index
    %c0_15 = arith.constant 0 : index
    %c0_16 = arith.constant 0 : index
    %23 = vector.load %arg6[%c1_13, %c0_14, %c0_15, %c0_16] : memref<4x9x9x4xf32, #tpu.memory_space<vmem>>, vector<1x9x9x4xf32>
    %24 = vector.shape_cast %23 : vector<1x9x9x4xf32> to vector<9x9x4xf32>
    %25 = vector.shape_cast %22 : vector<9x9x4xf32> to vector<1x9x9x4xf32>
    tpu.vector_store %arg6[%c1_13, %c0_14, %c0_15, %c0_16], %25 {strides = array<i32>} : memref<4x9x9x4xf32, #tpu.memory_space<vmem>>, vector<1x9x9x4xf32>,
    %c0_17 = arith.constant 0 : index
    %c2 = arith.constant 2 : index
    %26 = arith.index_cast %1 : i32 to index
    %c0_18 = arith.constant 0 : index
    %c0_19 = arith.constant 0 : index
    %27 = vector.load %arg2[%c0_17, %c2, %26, %c0_18, %c0_19] : memref<1x4x9x9x4xbf16, #tpu.memory_space<vmem>>, vector<1x1x9x9x4xbf16>
    %28 = vector.shape_cast %27 : vector<1x1x9x9x4xbf16> to vector<9x9x4xbf16>
    %29 = arith.extf %28 : vector<9x9x4xbf16> to vector<9x9x4xf32>
    %30 = arith.mulf %29, %5 : vector<9x9x4xf32>
    %cst_20 = arith.constant 0.000000e+00 : f32
    %31 = vector.broadcast %cst_20 : f32 to vector<9x9x4xf32>
    %32 = arith.maximumf %30, %31 : vector<9x9x4xf32>
    %c2_21 = arith.constant 2 : index
    %c0_22 = arith.constant 0 : index
    %c0_23 = arith.constant 0 : index
    %c0_24 = arith.constant 0 : index
    %33 = vector.load %arg6[%c2_21, %c0_22, %c0_23, %c0_24] : memref<4x9x9x4xf32, #tpu.memory_space<vmem>>, vector<1x9x9x4xf32>
    %34 = vector.shape_cast %33 : vector<1x9x9x4xf32> to vector<9x9x4xf32>
    %35 = vector.shape_cast %32 : vector<9x9x4xf32> to vector<1x9x9x4xf32>
    tpu.vector_store %arg6[%c2_21, %c0_22, %c0_23, %c0_24], %35 {strides = array<i32>} : memref<4x9x9x4xf32, #tpu.memory_space<vmem>>, vector<1x9x9x4xf32>,
    %c0_25 = arith.constant 0 : index
    %c3 = arith.constant 3 : index
    %36 = arith.index_cast %1 : i32 to index
    %c0_26 = arith.constant 0 : index
    %c0_27 = arith.constant 0 : index
    %37 = vector.load %arg2[%c0_25, %c3, %36, %c0_26, %c0_27] : memref<1x4x9x9x4xbf16, #tpu.memory_space<vmem>>, vector<1x1x9x9x4xbf16>
    %38 = vector.shape_cast %37 : vector<1x1x9x9x4xbf16> to vector<9x9x4xbf16>
    %39 = arith.extf %38 : vector<9x9x4xbf16> to vector<9x9x4xf32>
    %40 = arith.mulf %39, %5 : vector<9x9x4xf32>
    %cst_28 = arith.constant 0.000000e+00 : f32
    %41 = vector.broadcast %cst_28 : f32 to vector<9x9x4xf32>
    %42 = arith.maximumf %40, %41 : vector<9x9x4xf32>
    %c3_29 = arith.constant 3 : index
    %c0_30 = arith.constant 0 : index
    %c0_31 = arith.constant 0 : index
    %c0_32 = arith.constant 0 : index
    %43 = vector.load %arg6[%c3_29, %c0_30, %c0_31, %c0_32] : memref<4x9x9x4xf32, #tpu.memory_space<vmem>>, vector<1x9x9x4xf32>
    %44 = vector.shape_cast %43 : vector<1x9x9x4xf32> to vector<9x9x4xf32>
    %45 = vector.shape_cast %42 : vector<9x9x4xf32> to vector<1x9x9x4xf32>
    tpu.vector_store %arg6[%c3_29, %c0_30, %c0_31, %c0_32], %45 {strides = array<i32>} : memref<4x9x9x4xf32, #tpu.memory_space<vmem>>, vector<1x9x9x4xf32>,
    %c0_33 = arith.constant 0 : index
    %c0_34 = arith.constant 0 : index
    %c0_35 = arith.constant 0 : index
    %c0_36 = arith.constant 0 : index
    %46 = vector.load %arg6[%c0_33, %c0_34, %c0_35, %c0_36] : memref<4x9x9x4xf32, #tpu.memory_space<vmem>>, vector<1x8x8x4xf32>
    %47 = vector.shape_cast %46 : vector<1x8x8x4xf32> to vector<8x8x4xf32>
    %48 = vector.shape_cast %47 : vector<8x8x4xf32> to vector<64x4xf32>
    %49 = arith.truncf %48 : vector<64x4xf32> to vector<64x4xbf16>
    %c0_37 = arith.constant 0 : index
    %c0_38 = arith.constant 0 : index
    %50 = vector.load %arg7[%c0_37, %c0_38] : memref<64x40xbf16, #tpu.memory_space<vmem>>, vector<64x4xbf16>
    tpu.vector_store %arg7[%c0_37, %c0_38], %49 {strides = array<i32>} : memref<64x40xbf16, #tpu.memory_space<vmem>>, vector<64x4xbf16>,
    %c1_39 = arith.constant 1 : index
    %c0_40 = arith.constant 0 : index
    %c0_41 = arith.constant 0 : index
    %c0_42 = arith.constant 0 : index
    %51 = vector.load %arg6[%c1_39, %c0_40, %c0_41, %c0_42] : memref<4x9x9x4xf32, #tpu.memory_space<vmem>>, vector<1x8x8x4xf32>
    %52 = vector.shape_cast %51 : vector<1x8x8x4xf32> to vector<8x8x4xf32>
    %53 = vector.shape_cast %52 : vector<8x8x4xf32> to vector<64x4xf32>
    %54 = arith.truncf %53 : vector<64x4xf32> to vector<64x4xbf16>
    %c0_43 = arith.constant 0 : index
    %c4 = arith.constant 4 : index
    %55 = vector.load %arg7[%c0_43, %c4] : memref<64x40xbf16, #tpu.memory_space<vmem>>, vector<64x4xbf16>
    tpu.vector_store %arg7[%c0_43, %c4], %54 {strides = array<i32>} : memref<64x40xbf16, #tpu.memory_space<vmem>>, vector<64x4xbf16>,
    %c0_44 = arith.constant 0 : index
    %c0_45 = arith.constant 0 : index
    %c1_46 = arith.constant 1 : index
    %c0_47 = arith.constant 0 : index
    %56 = vector.load %arg6[%c0_44, %c0_45, %c1_46, %c0_47] : memref<4x9x9x4xf32, #tpu.memory_space<vmem>>, vector<1x8x8x4xf32>
    %57 = vector.shape_cast %56 : vector<1x8x8x4xf32> to vector<8x8x4xf32>
    %58 = vector.shape_cast %57 : vector<8x8x4xf32> to vector<64x4xf32>
    %59 = arith.truncf %58 : vector<64x4xf32> to vector<64x4xbf16>
    %c0_48 = arith.constant 0 : index
    %c8 = arith.constant 8 : index
    %60 = vector.load %arg7[%c0_48, %c8] : memref<64x40xbf16, #tpu.memory_space<vmem>>, vector<64x4xbf16>
    tpu.vector_store %arg7[%c0_48, %c8], %59 {strides = array<i32>} : memref<64x40xbf16, #tpu.memory_space<vmem>>, vector<64x4xbf16>,
    %c2_49 = arith.constant 2 : index
    %c0_50 = arith.constant 0 : index
    %c0_51 = arith.constant 0 : index
    %c0_52 = arith.constant 0 : index
    %61 = vector.load %arg6[%c2_49, %c0_50, %c0_51, %c0_52] : memref<4x9x9x4xf32, #tpu.memory_space<vmem>>, vector<1x8x8x4xf32>
    %62 = vector.shape_cast %61 : vector<1x8x8x4xf32> to vector<8x8x4xf32>
    %63 = vector.shape_cast %62 : vector<8x8x4xf32> to vector<64x4xf32>
    %64 = arith.truncf %63 : vector<64x4xf32> to vector<64x4xbf16>
    %c0_53 = arith.constant 0 : index
    %c12 = arith.constant 12 : index
    %65 = vector.load %arg7[%c0_53, %c12] : memref<64x40xbf16, #tpu.memory_space<vmem>>, vector<64x4xbf16>
    tpu.vector_store %arg7[%c0_53, %c12], %64 {strides = array<i32>} : memref<64x40xbf16, #tpu.memory_space<vmem>>, vector<64x4xbf16>,
    %c3_54 = arith.constant 3 : index
    %c0_55 = arith.constant 0 : index
    %c0_56 = arith.constant 0 : index
    %c0_57 = arith.constant 0 : index
    %66 = vector.load %arg6[%c3_54, %c0_55, %c0_56, %c0_57] : memref<4x9x9x4xf32, #tpu.memory_space<vmem>>, vector<1x8x8x4xf32>
    %67 = vector.shape_cast %66 : vector<1x8x8x4xf32> to vector<8x8x4xf32>
    %68 = vector.shape_cast %67 : vector<8x8x4xf32> to vector<64x4xf32>
    %69 = arith.truncf %68 : vector<64x4xf32> to vector<64x4xbf16>
    %c0_58 = arith.constant 0 : index
    %c16 = arith.constant 16 : index
    %70 = vector.load %arg7[%c0_58, %c16] : memref<64x40xbf16, #tpu.memory_space<vmem>>, vector<64x4xbf16>
    tpu.vector_store %arg7[%c0_58, %c16], %69 {strides = array<i32>} : memref<64x40xbf16, #tpu.memory_space<vmem>>, vector<64x4xbf16>,
    %c2_59 = arith.constant 2 : index
    %c0_60 = arith.constant 0 : index
    %c1_61 = arith.constant 1 : index
    %c0_62 = arith.constant 0 : index
    %71 = vector.load %arg6[%c2_59, %c0_60, %c1_61, %c0_62] : memref<4x9x9x4xf32, #tpu.memory_space<vmem>>, vector<1x8x8x4xf32>
    %72 = vector.shape_cast %71 : vector<1x8x8x4xf32> to vector<8x8x4xf32>
    %73 = vector.shape_cast %72 : vector<8x8x4xf32> to vector<64x4xf32>
    %74 = arith.truncf %73 : vector<64x4xf32> to vector<64x4xbf16>
    %c0_63 = arith.constant 0 : index
    %c20 = arith.constant 20 : index
    %75 = vector.load %arg7[%c0_63, %c20] : memref<64x40xbf16, #tpu.memory_space<vmem>>, vector<64x4xbf16>
    tpu.vector_store %arg7[%c0_63, %c20], %74 {strides = array<i32>} : memref<64x40xbf16, #tpu.memory_space<vmem>>, vector<64x4xbf16>,
    %c0_64 = arith.constant 0 : index
    %c1_65 = arith.constant 1 : index
    %c0_66 = arith.constant 0 : index
    %c0_67 = arith.constant 0 : index
    %76 = vector.load %arg6[%c0_64, %c1_65, %c0_66, %c0_67] : memref<4x9x9x4xf32, #tpu.memory_space<vmem>>, vector<1x8x8x4xf32>
    %77 = vector.shape_cast %76 : vector<1x8x8x4xf32> to vector<8x8x4xf32>
    %78 = vector.shape_cast %77 : vector<8x8x4xf32> to vector<64x4xf32>
    %79 = arith.truncf %78 : vector<64x4xf32> to vector<64x4xbf16>
    %c0_68 = arith.constant 0 : index
    %c24 = arith.constant 24 : index
    %80 = vector.load %arg7[%c0_68, %c24] : memref<64x40xbf16, #tpu.memory_space<vmem>>, vector<64x4xbf16>
    tpu.vector_store %arg7[%c0_68, %c24], %79 {strides = array<i32>} : memref<64x40xbf16, #tpu.memory_space<vmem>>, vector<64x4xbf16>,
    %c1_69 = arith.constant 1 : index
    %c1_70 = arith.constant 1 : index
    %c0_71 = arith.constant 0 : index
    %c0_72 = arith.constant 0 : index
    %81 = vector.load %arg6[%c1_69, %c1_70, %c0_71, %c0_72] : memref<4x9x9x4xf32, #tpu.memory_space<vmem>>, vector<1x8x8x4xf32>
    %82 = vector.shape_cast %81 : vector<1x8x8x4xf32> to vector<8x8x4xf32>
    %83 = vector.shape_cast %82 : vector<8x8x4xf32> to vector<64x4xf32>
    %84 = arith.truncf %83 : vector<64x4xf32> to vector<64x4xbf16>
    %c0_73 = arith.constant 0 : index
    %c28 = arith.constant 28 : index
    %85 = vector.load %arg7[%c0_73, %c28] : memref<64x40xbf16, #tpu.memory_space<vmem>>, vector<64x4xbf16>
    tpu.vector_store %arg7[%c0_73, %c28], %84 {strides = array<i32>} : memref<64x40xbf16, #tpu.memory_space<vmem>>, vector<64x4xbf16>,
    %c0_74 = arith.constant 0 : index
    %c1_75 = arith.constant 1 : index
    %c1_76 = arith.constant 1 : index
    %c0_77 = arith.constant 0 : index
    %86 = vector.load %arg6[%c0_74, %c1_75, %c1_76, %c0_77] : memref<4x9x9x4xf32, #tpu.memory_space<vmem>>, vector<1x8x8x4xf32>
    %87 = vector.shape_cast %86 : vector<1x8x8x4xf32> to vector<8x8x4xf32>
    %88 = vector.shape_cast %87 : vector<8x8x4xf32> to vector<64x4xf32>
    %89 = arith.truncf %88 : vector<64x4xf32> to vector<64x4xbf16>
    %c0_78 = arith.constant 0 : index
    %c32 = arith.constant 32 : index
    %90 = vector.load %arg7[%c0_78, %c32] : memref<64x40xbf16, #tpu.memory_space<vmem>>, vector<64x4xbf16>
    tpu.vector_store %arg7[%c0_78, %c32], %89 {strides = array<i32>} : memref<64x40xbf16, #tpu.memory_space<vmem>>, vector<64x4xbf16>,
    %c0_i32 = arith.constant 0 : i32
    %91 = arith.addi %1, %c0_i32 : i32
    %c0_79 = arith.constant 0 : index
    %c3_80 = arith.constant 3 : index
    %92 = arith.index_cast %91 : i32 to index
    %c0_81 = arith.constant 0 : index
    %c0_82 = arith.constant 0 : index
    %93 = vector.load %arg2[%c0_79, %c3_80, %92, %c0_81, %c0_82] : memref<1x4x9x9x4xbf16, #tpu.memory_space<vmem>>, vector<1x1x8x8x4xbf16>
    %94 = vector.shape_cast %93 : vector<1x1x8x8x4xbf16> to vector<8x8x4xbf16>
    %95 = arith.extf %94 : vector<8x8x4xbf16> to vector<8x8x4xf32>
    %96 = vector.broadcast %3 : vector<1x1x4xf32> to vector<8x8x4xf32>
    %97 = arith.mulf %95, %96 : vector<8x8x4xf32>
    %98 = vector.shape_cast %97 : vector<8x8x4xf32> to vector<64x4xf32>
    %99 = arith.truncf %98 : vector<64x4xf32> to vector<64x4xbf16>
    %c0_83 = arith.constant 0 : index
    %c36 = arith.constant 36 : index
    %100 = vector.load %arg7[%c0_83, %c36] : memref<64x40xbf16, #tpu.memory_space<vmem>>, vector<64x4xbf16>
    tpu.vector_store %arg7[%c0_83, %c36], %99 {strides = array<i32>} : memref<64x40xbf16, #tpu.memory_space<vmem>>, vector<64x4xbf16>,
    %c0_84 = arith.constant 0 : index
    %c0_85 = arith.constant 0 : index
    %101 = vector.load %arg7[%c0_84, %c0_85] : memref<64x40xbf16, #tpu.memory_space<vmem>>, vector<64x40xbf16>
    %c0_86 = arith.constant 0 : index
    %c0_87 = arith.constant 0 : index
    %102 = vector.load %arg4[%c0_86, %c0_87] : memref<40x8xbf16, #tpu.memory_space<vmem>>, vector<40x8xbf16>
    %cst_88 = arith.constant dense<0.000000e+00> : vector<64x8xf32>
    %103 = tpu.matmul %101, %102, %cst_88 {dimension_numbers = #tpu.dot_dimension_numbers<[1], [0], [0], [1], [0, 0, 1, 1], [], []>} : vector<64x40xbf16>, vector<40x8xbf16>, vector<64x8xf32> -> vector<64x8xf32>
    %c0_89 = arith.constant 0 : index
    %c0_90 = arith.constant 0 : index
    %c0_91 = arith.constant 0 : index
    %104 = vector.load %arg5[%c0_89, %c0_90, %c0_91] : memref<1x64x8xf32, #tpu.memory_space<vmem>>, vector<1x64x8xf32>
    %105 = vector.shape_cast %104 : vector<1x64x8xf32> to vector<64x8xf32>
    %106 = vector.shape_cast %103 : vector<64x8xf32> to vector<1x64x8xf32>
    tpu.vector_store %arg5[%c0_89, %c0_90, %c0_91], %106 {strides = array<i32>} : memref<1x64x8xf32, #tpu.memory_space<vmem>>, vector<1x64x8xf32>,
    return
  }
  func.func @transform_0(%arg0: i32, %arg1: i32) -> (i32, i32, i32, i32, i32) {
    %c0_i32 = arith.constant 0 : i32
    %c0_i32_0 = arith.constant 0 : i32
    %c0_i32_1 = arith.constant 0 : i32
    %c0_i32_2 = arith.constant 0 : i32
    %c0_i32_3 = arith.constant 0 : i32
    return %arg0, %c0_i32, %c0_i32_0, %c0_i32_1, %c0_i32_2 : i32, i32, i32, i32, i32
  }
  func.func @transform_1(%arg0: i32, %arg1: i32) -> (i32, i32) {
    %c0_i32 = arith.constant 0 : i32
    %c0_i32_0 = arith.constant 0 : i32
    %c0_i32_1 = arith.constant 0 : i32
    return %c0_i32, %c0_i32_0 : i32, i32
  }
  func.func @transform_2(%arg0: i32, %arg1: i32) -> (i32, i32) {
    %c0_i32 = arith.constant 0 : i32
    %c0_i32_0 = arith.constant 0 : i32
    %c0_i32_1 = arith.constant 0 : i32
    return %c0_i32, %c0_i32_0 : i32, i32
  }
  func.func @transform_3(%arg0: i32, %arg1: i32) -> (i32, i32, i32) {
    %c0_i32 = arith.constant 0 : i32
    %c0_i32_0 = arith.constant 0 : i32
    return %arg0, %arg1, %c0_i32 : i32, i32, i32
  }
}

</mosaic_0001>

<bundles_post_ra>
// kernel: basic_block_forward.2
= control target key start
LH: loop header
LB: loop body
LE: loop exit
PB: predicated region body
PF: predicated region fallthrough
CT: control target
= control target key end

     0   :  { %vm14_vm0 = vcmask 24576   ;;  %vm82_vm1 = vcmask 31744   ;;  %v444_v0 = vmov 0.0   ;;  %s1326_s0 = inlined_call_operand.vmem [shape: f32[512,4], index: 0, kind: input, shape index: {}]   ;;  %s1327_s1 = inlined_call_operand.vmem [shape: f32[1,4], index: 1, kind: output, shape index: {0}]   ;;  %s1328_s2 = inlined_call_operand.vmem [shape: f32[1,4], index: 2, kind: output, shape index: {1}]  }
   0x1   :  { %15 = vst.msk [vmem:[#allocation2] sm:$0x1] %vm14_vm0, %v444_v0  ;;  %16 = vst.msk [vmem:[#allocation3] sm:$0x1] %vm14_vm0, %v444_v0  ;;  %v465_v1 = vld [vmem:[%s1326_s0] sm:$0xff]  ;;  %v470_v2 = vld [vmem:[%s1326_s0 + $0x8] sm:$0xff] }
   0x2   :  { %v475_v3 = vld [vmem:[%s1326_s0 + $0x10] sm:$0xff]  ;;  %v480_v4 = vld [vmem:[%s1326_s0 + $0x18] sm:$0xff]  ;;  %v83_v5 = vsel %vm82_vm1, %v465_v1, 0.0  ;;  %v84_v6 = vsel %vm82_vm1, %v470_v2, 0.0  ;;  %v491_v8 = vld [vmem:[%s1326_s0 + $0x20] sm:$0xff] }
   0x3   :  { %v86_v7 = vsel %vm82_vm1, %v475_v3, 0.0  ;;  %v85_v9 = vadd.f32 %v84_v6, %v83_v5  ;;  %v88_v10 = vsel %vm82_vm1, %v480_v4, 0.0  ;;  %v498_v11 = vld [vmem:[%s1326_s0 + $0x28] sm:$0xff]  ;;  %v90_v13 = vsel %vm82_vm1, %v491_v8, 0.0  ;;  %v505_v14 = vld [vmem:[%s1326_s0 + $0x30] sm:$0xff]  ;;  %v510_v16 = vld [vmem:[%s1326_s0 + $0x38] sm:$0xff] }
   0x4   :  { %v515_v17 = vld [vmem:[%s1326_s0 + $0x40] sm:$0xff]  ;;  %v92_v18 = vsel %vm82_vm1, %v498_v11, 0.0  ;;  %v522_v19 = vld [vmem:[%s1326_s0 + $0x48] sm:$0xff]  ;;  %v527_v20 = vld [vmem:[%s1326_s0 + $0x50] sm:$0xff]  ;;  %v94_v23 = vsel %vm82_vm1, %v505_v14, 0.0  ;;  %v96_v25 = vsel %vm82_vm1, %v510_v16, 0.0 }
   0x5   :  { %v87_v12 = vadd.f32 %v86_v7, %v85_v9  ;;  %v532_v21 = vld [vmem:[%s1326_s0 + $0x58] sm:$0xff]  ;;  %v98_v26 = vsel %vm82_vm1, %v515_v17, 0.0  ;;  %v543_v27 = vld [vmem:[%s1326_s0 + $0x108] sm:$0xff]  ;;  %v548_v28 = vld [vmem:[%s1326_s0 + $0x110] sm:$0xff]  ;;  %v100_v30 = vsel %vm82_vm1, %v522_v19, 0.0  ;;  %v102_v31 = vsel %vm82_vm1, %v527_v20, 0.0 }
   0x6   :  { %v553_v29 = vld [vmem:[%s1326_s0 + $0x118] sm:$0xff]  ;;  %v561_v32 = vsel %vm82_vm1, %v532_v21, 0.0  ;;  %v566_v33 = vld [vmem:[%s1326_s0 + $0x120] sm:$0xff]  ;;  %v571_v34 = vld [vmem:[%s1326_s0 + $0x128] sm:$0xff]  ;;  %v580_v37 = vsel %vm82_vm1, %v543_v27, 0.0  ;;  %v584_v38 = vsel %vm82_vm1, %v548_v28, 0.0 }
   0x7   :  { %v89_v15 = vadd.f32 %v88_v10, %v87_v12  ;;  %v576_v35 = vld [vmem:[%s1326_s0 + $0x130] sm:$0xff]  ;;  %1351 = vst [vmem:[#allocation4_spill] sm:$0xff] %v580_v37  ;;  %1352 = vst [vmem:[#allocation5_spill] sm:$0xff] %v584_v38  ;;  %v588_v39 = vsel %vm82_vm1, %v553_v29, 0.0  ;;  %v593_v40 = vld [vmem:[%s1326_s0 + $0x138] sm:$0xff]  ;;  %v607_v43 = vsel %vm82_vm1, %v566_v33, 0.0 }
   0x8   :  { %1353 = vst [vmem:[#allocation6_spill] sm:$0xff] %v588_v39  ;;  %v598_v41 = vld [vmem:[%s1326_s0 + $0x140] sm:$0xff]  ;;  %v603_v42 = vld [vmem:[%s1326_s0 + $0x148] sm:$0xff]  ;;  %1354 = vst [vmem:[#allocation7_spill] sm:$0xff] %v607_v43  ;;  %v611_v44 = vsel %vm82_vm1, %v571_v34, 0.0  ;;  %v615_v45 = vsel %vm82_vm1, %v576_v35, 0.0 }
   0x9   :  { %v91_v22 = vadd.f32 %v90_v13, %v89_v15  ;;  %1355 = vst [vmem:[#allocation8_spill] sm:$0xff] %v611_v44  ;;  %1356 = vst [vmem:[#allocation9_spill] sm:$0xff] %v615_v45  ;;  %v620_v46 = vld [vmem:[%s1326_s0 + $0x150] sm:$0xff]  ;;  %v625_v47 = vld [vmem:[%s1326_s0 + $0x158] sm:$0xff]  ;;  %v634_v50 = vsel %vm82_vm1, %v593_v40, 0.0  ;;  %v638_v51 = vsel %vm82_vm1, %v598_v41, 0.0 }
   0xa   :  { %v630_v48 = vld [vmem:[%s1326_s0 + $0x160] sm:$0xff]  ;;  %1357 = vst [vmem:[#allocation10_spill] sm:$0xff] %v634_v50  ;;  %1358 = vst [vmem:[#allocation11_spill] sm:$0xff] %v638_v51  ;;  %v642_v52 = vsel %vm82_vm1, %v603_v42, 0.0  ;;  %v647_v53 = vld [vmem:[%s1326_s0 + $0x168] sm:$0xff]  ;;  %v661_v56 = vsel %vm82_vm1, %v620_v46, 0.0 }
   0xb   :  { %v93_v24 = vadd.f32 %v92_v18, %v91_v22  ;;  %1359 = vst [vmem:[#allocation12_spill] sm:$0xff] %v642_v52  ;;  %v652_v54 = vld [vmem:[%s1326_s0 + $0x170] sm:$0xff]  ;;  %v657_v55 = vld [vmem:[%s1326_s0 + $0x178] sm:$0xff]  ;;  %1360 = vst [vmem:[#allocation13_spill] sm:$0xff] %v661_v56  ;;  %v665_v57 = vsel %vm82_vm1, %v625_v47, 0.0  ;;  %v669_v58 = vsel %vm82_vm1, %v630_v48, 0.0 }
   0xc   :  { %1361 = vst [vmem:[#allocation14_spill] sm:$0xff] %v665_v57  ;;  %1362 = vst [vmem:[#allocation15_spill] sm:$0xff] %v669_v58  ;;  %v674_v59 = vld [vmem:[%s1326_s0 + $0x60] sm:$0xff]  ;;  %v684_v61 = vld [vmem:[%s1326_s0 + $0x188] sm:$0xff]  ;;  %v693_v0 = vsel %vm82_vm1, %v647_v53, 0.0  ;;  %v697_v5 = vsel %vm82_vm1, %v652_v54, 0.0 }
   0xd   :  { %v95_v36 = vadd.f32 %v94_v23, %v93_v24  ;;  %v679_v60 = vld [vmem:[%s1326_s0 + $0x180] sm:$0xff]  ;;  %v689_v62 = vld [vmem:[%s1326_s0 + $0x190] sm:$0xff]  ;;  %1363 = vst [vmem:[#allocation16_spill] sm:$0xff] %v693_v0  ;;  %1364 = vst [vmem:[#allocation17_spill] sm:$0xff] %v697_v5  ;;  %v701_v6 = vsel %vm82_vm1, %v657_v55, 0.0  ;;  %v724_v13 = vsel %vm82_vm1, %v684_v61, 0.0 }
   0xe   :  { %1365 = vst [vmem:[#allocation18_spill] sm:$0xff] %v701_v6  ;;  %v706_v7 = vld [vmem:[%s1326_s0 + $0x198] sm:$0xff]  ;;  %v711_v9 = vld [vmem:[%s1326_s0 + $0x1a0] sm:$0xff]  ;;  %v716_v10 = vld [vmem:[%s1326_s0 + $0x1a8] sm:$0xff]  ;;  %v720_v12 = vsel %vm82_vm1, %v679_v60, 0.0  ;;  %v728_v15 = vsel %vm82_vm1, %v689_v62, 0.0 }
   0xf   :  { %v97_v49 = vadd.f32 %v96_v25, %v95_v36  ;;  %1366 = vst [vmem:[#allocation19_spill] sm:$0xff] %v720_v12  ;;  %1367 = vst [vmem:[#allocation20_spill] sm:$0xff] %v724_v13  ;;  %v733_v18 = vld [vmem:[%s1326_s0 + $0x68] sm:$0xff]  ;;  %v738_v22 = vld [vmem:[%s1326_s0 + $0x1b0] sm:$0xff]  ;;  %v756_v36 = vsel %vm82_vm1, %v711_v9, 0.0 }
  0x10   :  { %1368 = vst [vmem:[#allocation21_spill] sm:$0xff] %v728_v15  ;;  %v743_v23 = vld [vmem:[%s1326_s0 + $0x1b8] sm:$0xff]  ;;  %v748_v24 = vld [vmem:[%s1326_s0 + $0x1c0] sm:$0xff]  ;;  %1370 = vst [vmem:[#allocation23_spill] sm:$0xff] %v756_v36  ;;  %v779_v36 = vsel %vm82_vm1, %v738_v22, 0.0 }
  0x11   :  { %v99_v63 = vadd.f32 %v98_v26, %v97_v49  ;;  %v752_v26 = vsel %vm82_vm1, %v706_v7, 0.0  ;;  %v760_v49 = vsel %vm82_vm1, %v716_v10, 0.0  ;;  %v765_v15 = vld [vmem:[%s1326_s0 + $0x1c8] sm:$0xff]  ;;  %1374 = vst [vmem:[#allocation27_spill] sm:$0xff] %v779_v36  ;;  %v792_v13 = vld [vmem:[%s1326_s0 + $0x1e0] sm:$0xff]  ;;  %v802_v36 = vld [vmem:[%s1326_s0 + $0x1f0] sm:$0xff] }
  0x12   :  { %1369 = vst [vmem:[#allocation22_spill] sm:$0xff] %v752_v26  ;;  %1371 = vst [vmem:[#allocation24_spill] sm:$0xff] %v760_v49  ;;  %v783_v49 = vsel %vm82_vm1, %v743_v23, 0.0  ;;  %v787_v26 = vsel %vm82_vm1, %v748_v24, 0.0  ;;  %v797_v12 = vld [vmem:[%s1326_s0 + $0x1e8] sm:$0xff]  ;;  %v806_v6 = vsel %vm82_vm1, %v765_v15, 0.0 }
  0x13   :  { %v101_v25 = vadd.f32 %v100_v30, %v99_v63  ;;  %v770_v30 = vld [vmem:[%s1326_s0 + $0x1d0] sm:$0xff]  ;;  %v775_v63 = vld [vmem:[%s1326_s0 + $0x1d8] sm:$0xff]  ;;  %1375 = vst [vmem:[#allocation28_spill] sm:$0xff] %v783_v49  ;;  %1376 = vst [vmem:[#allocation29_spill] sm:$0xff] %v787_v26 }
  0x14   :  { %1372 = vst [vmem:[#allocation25_spill] sm:$0xff] %v770_v30  ;;  %1373 = vst [vmem:[#allocation26_spill] sm:$0xff] %v775_v63  ;;  %v810_v26 = vsel %vm82_vm1, %v770_v30, 0.0  ;;  %v814_v5 = vsel %vm82_vm1, %v775_v63, 0.0  ;;  %v819_v0 = vld [vmem:[%s1326_s0 + $0x1f8] sm:$0xff]  ;;  %v873_v56 = vld [vmem:[%s1326_s0 + $0xa0] sm:$0xff] }
  0x15   :  { %1377 = vst [vmem:[#allocation30_spill] sm:$0xff] %v792_v13  ;;  %1378 = vst [vmem:[#allocation31_spill] sm:$0xff] %v797_v12  ;;  %v103_v49 = vadd.f32 %v102_v31, %v101_v25  ;;  %v106_v31 = vsel %vm82_vm1, %v674_v59, 0.0  ;;  %v825_v25 = vsel %vm82_vm1, %v792_v13, 0.0  ;;  %v841_v57 = vsel %vm82_vm1, %v819_v0, 0.0  ;;  %v878_v51 = vld [vmem:[%s1326_s0 + $0xa8] sm:$0xff] }
  0x16   :  { %1379 = vst [vmem:[#allocation32_spill] sm:$0xff] %v802_v36  ;;  %1380 = vst [vmem:[#allocation33_spill] sm:$0xff] %v806_v6  ;;  %v829_v6 = vsel %vm82_vm1, %v797_v12, 0.0  ;;  %v883_v50 = vld [vmem:[%s1326_s0 + $0xb0] sm:$0xff]  ;;  %v888_v45 = vld [vmem:[%s1326_s0 + $0xb8] sm:$0xff] }
  0x17   :  { %1381 = vst [vmem:[#allocation34_spill] sm:$0xff] %v810_v26  ;;  %1382 = vst [vmem:[#allocation35_spill] sm:$0xff] %v814_v5  ;;  %v833_v26 = vsel %vm82_vm1, %v802_v36, 0.0  ;;  %v31_v5 = vld [vmem:[%s1326_s0 + $0x70] sm:$0xff]  ;;  %v105_v58 = vadd.f32 %v561_v32, %v103_v49  ;;  %v108_v32 = vsel %vm82_vm1, %v733_v18, 0.0  ;;  %v898_v43 = vld [vmem:[%s1326_s0 + $0xc0] sm:$0xff] }
  0x18   :  { %1383 = vst [vmem:[#allocation36_spill] sm:$0xff] %v819_v0  ;;  %1384 = vst [vmem:[#allocation37_spill] sm:$0xff] %v825_v25  ;;  %v846_v25 = vld [vmem:[%s1326_s0 + $0x78] sm:$0xff]  ;;  %v863_v49 = vld [vmem:[%s1326_s0 + $0x90] sm:$0xff]  ;;  %v110_v44 = vsel %vm82_vm1, %v31_v5, 0.0  ;;  %v222_v0 = vmul.f32 %v475_v3, %v475_v3  ;;  %v122_v3 = vsel %vm82_vm1, %v873_v56, 0.0 }
  0x19   :  { %1385 = vst [vmem:[#allocation38_spill] sm:$0xff] %v829_v6  ;;  %1386 = vst [vmem:[#allocation39_spill] sm:$0xff] %v833_v26  ;;  %v851_v6 = vld [vmem:[%s1326_s0 + $0x80] sm:$0xff]  ;;  %v856_v26 = vld [vmem:[%s1326_s0 + $0x88] sm:$0xff]  ;;  %v107_v52 = vadd.f32 %v106_v31, %v105_v58  ;;  %v220_v58 = vmul.f32 %v465_v1, %v465_v1  ;;  %v221_v31 = vmul.f32 %v470_v2, %v470_v2  ;;  %v112_v1 = vsel %vm82_vm1, %v846_v25, 0.0 }
  0x1a   :  { %1387 = vst [vmem:[#allocation40_spill] sm:$0xff] %v841_v57  ;;  %1388 = vst [vmem:[#allocation41_spill] sm:$0xff] %v846_v25  ;;  %v868_v57 = vld [vmem:[%s1326_s0 + $0x98] sm:$0xff]  ;;  %v903_v39 = vld [vmem:[%s1326_s0 + $0xc8] sm:$0xff]  ;;  %v114_v2 = vsel %vm82_vm1, %v851_v6, 0.0  ;;  %v952_v63 = vsel %vm82_vm1, %v888_v45, 0.0 }
  0x1b   :  { %1389 = vst [vmem:[#allocation42_spill] sm:$0xff] %v851_v6  ;;  %1390 = vst [vmem:[#allocation43_spill] sm:$0xff] %v856_v26  ;;  %v908_v38 = vld [vmem:[%s1326_s0 + $0xd0] sm:$0xff]  ;;  %v109_v37 = vadd.f32 %v108_v32, %v107_v52  ;;  %v919_v36 = vld [vmem:[%s1326_s0 + $0xd8] sm:$0xff]  ;;  %v116_v52 = vsel %vm82_vm1, %v856_v26, 0.0  ;;  %v118_v32 = vsel %vm82_vm1, %v863_v49, 0.0 }
  0x1c   :  { %1391 = vst [vmem:[#allocation44_spill] sm:$0xff] %v863_v49  ;;  %1392 = vst [vmem:[#allocation45_spill] sm:$0xff] %v868_v57  ;;  %v924_v12 = vld [vmem:[%s1326_s0 + $0xe0] sm:$0xff]  ;;  %v120_v6 = vsel %vm82_vm1, %v868_v57, 0.0  ;;  %v937_v25 = vld [vmem:[%s1326_s0 + $0xe8] sm:$0xff]  ;;  %v124_v49 = vsel %vm82_vm1, %v878_v51, 0.0 }
  0x1d   :  { %1393 = vst [vmem:[#allocation46_spill] sm:$0xff] %v873_v56  ;;  %1394 = vst [vmem:[#allocation47_spill] sm:$0xff] %v878_v51  ;;  %v942_v13 = vld [vmem:[%s1326_s0 + $0xf0] sm:$0xff]  ;;  %v111_v26 = vadd.f32 %v110_v44, %v109_v37  ;;  %v126_v57 = vsel %vm82_vm1, %v883_v50, 0.0  ;;  %v223_v56 = vmul.f32 %v480_v4, %v480_v4  ;;  %v956_v30 = vsel %vm82_vm1, %v898_v43, 0.0 }
  0x1e   :  { %1395 = vst [vmem:[#allocation48_spill] sm:$0xff] %v883_v50  ;;  %1396 = vst [vmem:[#allocation49_spill] sm:$0xff] %v888_v45  ;;  %v960_v37 = vsel %vm82_vm1, %v903_v39, 0.0  ;;  %v964_v44 = vsel %vm82_vm1, %v908_v38, 0.0  ;;  %v968_v4 = vsel %vm82_vm1, %v919_v36, 0.0  ;;  %v972_v45 = vsel %vm82_vm1, %v924_v12, 0.0 }
  0x1f   :  { %1397 = vst [vmem:[#allocation50_spill] sm:$0xff] %v898_v43  ;;  %1398 = vst [vmem:[#allocation51_spill] sm:$0xff] %v903_v39  ;;  %v113_v50 = vadd.f32 %v112_v1, %v111_v26  ;;  %v224_v43 = vmul.f32 %v491_v8, %v491_v8  ;;  %v978_v39 = vsel %vm82_vm1, %v937_v25, 0.0  ;;  %v225_v26 = vmul.f32 %v498_v11, %v498_v11 }
  0x20   :  { %1399 = vst [vmem:[#allocation52_spill] sm:$0xff] %v908_v38  ;;  %1400 = vst [vmem:[#allocation53_spill] sm:$0xff] %v919_v36  ;;  %v982_v38 = vsel %vm82_vm1, %v942_v13, 0.0  ;;  %v226_v1 = vmul.f32 %v505_v14, %v505_v14  ;;  %v228_v8 = vmul.f32 %v515_v17, %v515_v17  ;;  %v231_v51 = vmul.f32 %v532_v21, %v532_v21 }
  0x21   :  { %1401 = vst [vmem:[#allocation54_spill] sm:$0xff] %v924_v12  ;;  %1402 = vst [vmem:[#allocation55_spill] sm:$0xff] %v937_v25  ;;  %v115_v36 = vadd.f32 %v114_v2, %v113_v50  ;;  %v227_v12 = vmul.f32 %v510_v16, %v510_v16  ;;  %v229_v25 = vmul.f32 %v522_v19, %v522_v19 }
  0x22   :  { %1403 = vst [vmem:[#allocation56_spill] sm:$0xff] %v942_v13  ;;  %v230_v13 = vmul.f32 %v527_v20, %v527_v20  ;;  %v232_v11 = vmul.f32 %v674_v59, %v674_v59  ;;  %v1002_v14 = vmul.f32 %v733_v18, %v733_v18  ;;  %v1004_v50 = vmul.f32 %v31_v5, %v31_v5 }
  0x23   :  { %v117_v16 = vadd.f32 %v116_v52, %v115_v36  ;;  %v253_v17 = vmul.f32 %v543_v27, %v543_v27  ;;  %v254_v19 = vmul.f32 %v548_v28, %v548_v28  ;;  %v255_v20 = vmul.f32 %v553_v29, %v553_v29 }
  0x24   :  { %v256_v21 = vmul.f32 %v566_v33, %v566_v33  ;;  %v257_v59 = vmul.f32 %v571_v34, %v571_v34  ;;  %v258_v18 = vmul.f32 %v576_v35, %v576_v35  ;;  %v259_v36 = vmul.f32 %v593_v40, %v593_v40 }
  0x25   :  { %v119_v5 = vadd.f32 %v118_v32, %v117_v16  ;;  %v260_v27 = vmul.f32 %v598_v41, %v598_v41  ;;  %v261_v28 = vmul.f32 %v603_v42, %v603_v42  ;;  %v262_v29 = vmul.f32 %v620_v46, %v620_v46 }
  0x26   :  { %v263_v33 = vmul.f32 %v625_v47, %v625_v47  ;;  %v284_v34 = vsel %vm82_vm1, %v220_v58, 0.0  ;;  %v285_v35 = vsel %vm82_vm1, %v221_v31, 0.0  ;;  %v264_v40 = vmul.f32 %v630_v48, %v630_v48 }
  0x27   :  { %v121_v2 = vadd.f32 %v120_v6, %v119_v5  ;;  %v286_v52 = vadd.f32 %v285_v35, %v284_v34  ;;  %v287_v41 = vsel %vm82_vm1, %v222_v0, 0.0  ;;  %v265_v42 = vmul.f32 %v647_v53, %v647_v53  ;;  %v1406_v35 = vld [vmem:[#allocation30_spill] sm:$0xff] }
  0x28   :  { %v266_v46 = vmul.f32 %v652_v54, %v652_v54  ;;  %v267_v47 = vmul.f32 %v657_v55, %v657_v55  ;;  %v289_v58 = vsel %vm82_vm1, %v223_v56, 0.0  ;;  %v268_v6 = vmul.f32 %v679_v60, %v679_v60 }
  0x29   :  { %v123_v32 = vadd.f32 %v122_v3, %v121_v2  ;;  %v269_v48 = vmul.f32 %v684_v61, %v684_v61  ;;  %v288_v31 = vadd.f32 %v287_v41, %v286_v52  ;;  %v270_v0 = vmul.f32 %v689_v62, %v689_v62 }
  0x2a   :  { %v271_v53 = vmul.f32 %v706_v7, %v706_v7  ;;  %v272_v54 = vmul.f32 %v711_v9, %v711_v9  ;;  %v291_v55 = vsel %vm82_vm1, %v224_v43, 0.0  ;;  %v273_v3 = vmul.f32 %v716_v10, %v716_v10  ;;  %v1405_v10 = vld [vmem:[#allocation26_spill] sm:$0xff] }
  0x2b   :  { %v125_v56 = vadd.f32 %v124_v49, %v123_v32  ;;  %v274_v60 = vmul.f32 %v738_v22, %v738_v22  ;;  %v290_v61 = vadd.f32 %v289_v58, %v288_v31  ;;  %v275_v16 = vmul.f32 %v743_v23, %v743_v23  ;;  %v1404_v49 = vld [vmem:[#allocation25_spill] sm:$0xff]  ;;  %v1407_v23 = vld [vmem:[#allocation31_spill] sm:$0xff] }
  0x2c   :  { %v276_v62 = vmul.f32 %v748_v24, %v748_v24  ;;  %v277_v7 = vmul.f32 %v765_v15, %v765_v15  ;;  %v293_v9 = vsel %vm82_vm1, %v225_v26, 0.0  ;;  %v278_v5 = vmul.f32 %v1404_v49, %v1404_v49  ;;  %v1408_v24 = vld [vmem:[#allocation32_spill] sm:$0xff] }
  0x2d   :  { %v127_v43 = vadd.f32 %v126_v57, %v125_v56  ;;  %v279_v34 = vmul.f32 %v1405_v10, %v1405_v10  ;;  %v292_v22 = vadd.f32 %v291_v55, %v290_v61  ;;  %v280_v2 = vmul.f32 %v1406_v35, %v1406_v35  ;;  %v1409_v26 = vld [vmem:[#allocation36_spill] sm:$0xff] }
  0x2e   :  { %v281_v52 = vmul.f32 %v1407_v23, %v1407_v23  ;;  %v282_v41 = vmul.f32 %v1408_v24, %v1408_v24  ;;  %v295_v15 = vsel %vm82_vm1, %v226_v1, 0.0  ;;  %v283_v58 = vmul.f32 %v1409_v26, %v1409_v26  ;;  %v1410_v24 = vld [vmem:[#allocation41_spill] sm:$0xff] }
  0x2f   :  { %v129_v57 = vadd.f32 %v952_v63, %v127_v43  ;;  %v294_v32 = vadd.f32 %v293_v9, %v292_v22  ;;  %v297_v31 = vsel %vm82_vm1, %v227_v12, 0.0  ;;  %v299_v55 = vsel %vm82_vm1, %v228_v8, 0.0 }
  0x30   :  { %v301_v56 = vsel %vm82_vm1, %v229_v25, 0.0  ;;  %v303_v61 = vsel %vm82_vm1, %v230_v13, 0.0  ;;  %v305_v49 = vsel %vm82_vm1, %v231_v51, 0.0  ;;  %v307_v1 = vsel %vm82_vm1, %v232_v11, 0.0 }
  0x31   :  { %v131_v10 = vadd.f32 %v956_v30, %v129_v57  ;;  %v296_v35 = vadd.f32 %v295_v15, %v294_v32  ;;  %v1084_v63 = vsel %vm82_vm1, %v253_v17, 0.0  ;;  %v1087_v9 = vsel %vm82_vm1, %v254_v19, 0.0 }
  0x32   :  { %v1090_v12 = vsel %vm82_vm1, %v255_v20, 0.0  ;;  %v1093_v25 = vsel %vm82_vm1, %v256_v21, 0.0  ;;  %v1096_v13 = vsel %vm82_vm1, %v257_v59, 0.0  ;;  %v1100_v8 = vsel %vm82_vm1, %v258_v18, 0.0 }
  0x33   :  { %v133_v51 = vadd.f32 %v960_v37, %v131_v10  ;;  %v298_v30 = vadd.f32 %v297_v31, %v296_v35  ;;  %v1103_v11 = vsel %vm82_vm1, %v259_v36, 0.0  ;;  %v1106_v17 = vsel %vm82_vm1, %v260_v27, 0.0 }
  0x34   :  { %v1109_v19 = vsel %vm82_vm1, %v261_v28, 0.0  ;;  %v1112_v20 = vsel %vm82_vm1, %v262_v29, 0.0  ;;  %v1115_v21 = vsel %vm82_vm1, %v263_v33, 0.0  ;;  %v1119_v18 = vsel %vm82_vm1, %v264_v40, 0.0 }
  0x35   :  { %v135_v37 = vadd.f32 %v964_v44, %v133_v51  ;;  %v300_v59 = vadd.f32 %v299_v55, %v298_v30  ;;  %v1122_v36 = vsel %vm82_vm1, %v265_v42, 0.0  ;;  %v1125_v27 = vsel %vm82_vm1, %v266_v46, 0.0  ;;  %v1414_v51 = vld [vmem:[#allocation4_spill] sm:$0xff] }
  0x36   :  { %v1128_v28 = vsel %vm82_vm1, %v267_v47, 0.0  ;;  %v1131_v29 = vsel %vm82_vm1, %v268_v6, 0.0  ;;  %v1134_v33 = vsel %vm82_vm1, %v269_v48, 0.0  ;;  %v1138_v40 = vsel %vm82_vm1, %v270_v0, 0.0 }
  0x37   :  { %v137_v44 = vadd.f32 %v968_v4, %v135_v37  ;;  %v302_v43 = vadd.f32 %v301_v56, %v300_v59  ;;  %v1141_v42 = vsel %vm82_vm1, %v271_v53, 0.0  ;;  %v1144_v46 = vsel %vm82_vm1, %v272_v54, 0.0  ;;  %v1158_v4 = vld [vmem:[%s1326_s0 + $0xf8] sm:$0xff]  ;;  %v1415_v59 = vld [vmem:[#allocation45_spill] sm:$0xff] }
  0x38   :  { %v1147_v47 = vsel %vm82_vm1, %v273_v3, 0.0  ;;  %v1150_v6 = vsel %vm82_vm1, %v274_v60, 0.0  ;;  %v1153_v48 = vsel %vm82_vm1, %v275_v16, 0.0  ;;  %v1162_v54 = vsel %vm82_vm1, %v276_v62, 0.0  ;;  %v1412_v56 = vld [vmem:[#allocation43_spill] sm:$0xff] }
  0x39   :  { %v139_v0 = vadd.f32 %v972_v45, %v137_v44  ;;  %v304_v53 = vadd.f32 %v303_v61, %v302_v43  ;;  %v1165_v3 = vsel %vm82_vm1, %v277_v7, 0.0  ;;  %v1168_v60 = vsel %vm82_vm1, %v278_v5, 0.0  ;;  %v1182_v45 = vld [vmem:[%s1326_s0 + $0x100] sm:$0xff]  ;;  %v1416_v43 = vld [vmem:[#allocation5_spill] sm:$0xff] }
  0x3a   :  { %v1171_v16 = vsel %vm82_vm1, %v279_v34, 0.0  ;;  %v1174_v22 = vsel %vm82_vm1, %v280_v2, 0.0  ;;  %v1177_v23 = vsel %vm82_vm1, %v281_v52, 0.0  ;;  %v1186_v5 = vsel %vm82_vm1, %v282_v41, 0.0  ;;  %v1411_v41 = vld [vmem:[#allocation42_spill] sm:$0xff] }
  0x3b   :  { %v141_v62 = vadd.f32 %v978_v39, %v139_v0  ;;  %v306_v7 = vadd.f32 %v305_v49, %v304_v53  ;;  %v1189_v34 = vsel %vm82_vm1, %v283_v58, 0.0  ;;  %v144_v2 = vsel %vm82_vm1, %v1158_v4, 0.0 }
  0x3c   :  { %v235_v52 = vmul.f32 %v1410_v24, %v1410_v24  ;;  %v309_v15 = vsel %vm82_vm1, %v1002_v14, 0.0  ;;  %v146_v39 = vsel %vm82_vm1, %v1182_v45, 0.0  ;;  %v236_v32 = vmul.f32 %v1411_v41, %v1411_v41  ;;  %v1418_v24 = vld [vmem:[#allocation6_spill] sm:$0xff]  ;;  %v1420_v41 = vld [vmem:[#allocation7_spill] sm:$0xff] }
  0x3d   :  { %v143_v57 = vadd.f32 %v982_v38, %v141_v62  ;;  %v308_v26 = vadd.f32 %v307_v1, %v306_v7  ;;  %v311_v58 = vsel %vm82_vm1, %v1004_v50, 0.0  ;;  %v237_v61 = vmul.f32 %v1412_v56, %v1412_v56  ;;  %v1413_v38 = vld [vmem:[#allocation44_spill] sm:$0xff]  ;;  %v1417_v62 = vld [vmem:[#allocation46_spill] sm:$0xff] }
  0x3e   :  { %v313_v49 = vsel %vm82_vm1, %v235_v52, 0.0  ;;  %v238_v35 = vmul.f32 %v1413_v38, %v1413_v38  ;;  %v315_v1 = vsel %vm82_vm1, %v236_v32, 0.0  ;;  %v239_v50 = vmul.f32 %v1415_v59, %v1415_v59 }
  0x3f   :  { %v145_v31 = vadd.f32 %v144_v2, %v143_v57  ;;  %v310_v55 = vadd.f32 %v309_v15, %v308_v26  ;;  %v317_v44 = vsel %vm82_vm1, %v237_v61, 0.0  ;;  %v240_v7 = vmul.f32 %v1417_v62, %v1417_v62  ;;  %v1419_v57 = vld [vmem:[#allocation47_spill] sm:$0xff]  ;;  %v1422_v61 = vld [vmem:[#allocation8_spill] sm:$0xff] }
  0x40   :  { %v319_v2 = vsel %vm82_vm1, %v238_v35, 0.0  ;;  %v241_v26 = vmul.f32 %v1419_v57, %v1419_v57 }
  0x41   :  { %v147_v14 = vadd.f32 %v146_v39, %v145_v31  ;;  %v312_v10 = vadd.f32 %v311_v58, %v310_v55  ;;  %v321_v39 = vsel %vm82_vm1, %v239_v50, 0.0  ;;  %v1421_v31 = vld [vmem:[#allocation48_spill] sm:$0xff]  ;;  %v323_v56 = vsel %vm82_vm1, %v240_v7, 0.0 }
  0x42   :  { %v242_v55 = vmul.f32 %v1421_v31, %v1421_v31  ;;  %v325_v35 = vsel %vm82_vm1, %v241_v26, 0.0 }
  0x43   :  { %v149_v30 = vadd.f32 %v1414_v51, %v147_v14  ;;  %v314_v37 = vadd.f32 %v313_v49, %v312_v10  ;;  %v1423_v10 = vld [vmem:[#allocation49_spill] sm:$0xff] }
  0x44   :  { %v243_v38 = vmul.f32 %v1423_v10, %v1423_v10  ;;  %v327_v50 = vsel %vm82_vm1, %v242_v55, 0.0 }
  0x45   :  { %v151_v0 = vadd.f32 %v1416_v43, %v149_v30  ;;  %v316_v53 = vadd.f32 %v315_v1, %v314_v37  ;;  %v1424_v1 = vld [vmem:[#allocation9_spill] sm:$0xff]  ;;  %v1425_v37 = vld [vmem:[#allocation50_spill] sm:$0xff] }
  0x46   :  { %v244_v59 = vmul.f32 %v1425_v37, %v1425_v37  ;;  %v329_v7 = vsel %vm82_vm1, %v243_v38, 0.0 }
  0x47   :  { %v153_v52 = vadd.f32 %v1418_v24, %v151_v0  ;;  %v318_v15 = vadd.f32 %v317_v44, %v316_v53  ;;  %v1426_v44 = vld [vmem:[#allocation10_spill] sm:$0xff]  ;;  %v1427_v53 = vld [vmem:[#allocation51_spill] sm:$0xff] }
  0x48   :  { %v245_v62 = vmul.f32 %v1427_v53, %v1427_v53  ;;  %v331_v26 = vsel %vm82_vm1, %v244_v59, 0.0 }
  0x49   :  { %v155_v32 = vadd.f32 %v1420_v41, %v153_v52  ;;  %v320_v58 = vadd.f32 %v319_v2, %v318_v15  ;;  %v1428_v2 = vld [vmem:[#allocation11_spill] sm:$0xff]  ;;  %v1429_v15 = vld [vmem:[#allocation52_spill] sm:$0xff] }
  0x4a   :  { %v246_v57 = vmul.f32 %v1429_v15, %v1429_v15  ;;  %v333_v55 = vsel %vm82_vm1, %v245_v62, 0.0 }
  0x4b   :  { %v157_v49 = vadd.f32 %v1422_v61, %v155_v32  ;;  %v322_v14 = vadd.f32 %v321_v39, %v320_v58  ;;  %v1430_v39 = vld [vmem:[#allocation12_spill] sm:$0xff]  ;;  %v1431_v58 = vld [vmem:[#allocation53_spill] sm:$0xff] }
  0x4c   :  { %v247_v31 = vmul.f32 %v1431_v58, %v1431_v58  ;;  %v335_v38 = vsel %vm82_vm1, %v246_v57, 0.0  ;;  %v1439_v57 = vld [vmem:[#allocation17_spill] sm:$0xff]  ;;  %v1440_v58 = vld [vmem:[#allocation18_spill] sm:$0xff] }
  0x4d   :  { %v159_v51 = vadd.f32 %v1424_v1, %v157_v49  ;;  %v324_v30 = vadd.f32 %v323_v56, %v322_v14  ;;  %v1432_v56 = vld [vmem:[#allocation13_spill] sm:$0xff]  ;;  %v1433_v14 = vld [vmem:[#allocation54_spill] sm:$0xff] }
  0x4e   :  { %v248_v10 = vmul.f32 %v1433_v14, %v1433_v14  ;;  %v337_v59 = vsel %vm82_vm1, %v247_v31, 0.0 }
  0x4f   :  { %v161_v43 = vadd.f32 %v1426_v44, %v159_v51  ;;  %v326_v0 = vadd.f32 %v325_v35, %v324_v30  ;;  %v1434_v35 = vld [vmem:[#allocation14_spill] sm:$0xff]  ;;  %v1435_v30 = vld [vmem:[#allocation55_spill] sm:$0xff] }
  0x50   :  { %v249_v37 = vmul.f32 %v1435_v30, %v1435_v30  ;;  %v339_v62 = vsel %vm82_vm1, %v248_v10, 0.0  ;;  %v1442_v10 = vld [vmem:[#allocation20_spill] sm:$0xff] }
  0x51   :  { %v163_v24 = vadd.f32 %v1428_v2, %v161_v43  ;;  %v328_v52 = vadd.f32 %v327_v50, %v326_v0  ;;  %v1436_v50 = vld [vmem:[#allocation15_spill] sm:$0xff]  ;;  %v1437_v0 = vld [vmem:[#allocation56_spill] sm:$0xff] }
  0x52   :  { %v250_v53 = vmul.f32 %v1437_v0, %v1437_v0  ;;  %v341_v15 = vsel %vm82_vm1, %v249_v37, 0.0  ;;  %v1444_v37 = vld [vmem:[#allocation22_spill] sm:$0xff]  ;;  %v1446_v0 = vld [vmem:[#allocation24_spill] sm:$0xff] }
  0x53   :  { %v165_v41 = vadd.f32 %v1430_v39, %v163_v24  ;;  %v330_v32 = vadd.f32 %v329_v7, %v328_v52  ;;  %v1438_v7 = vld [vmem:[#allocation16_spill] sm:$0xff]  ;;  %v251_v52 = vmul.f32 %v1158_v4, %v1158_v4 }
  0x55   :  { %v167_v61 = vadd.f32 %v1432_v56, %v165_v41  ;;  %v332_v49 = vadd.f32 %v331_v26, %v330_v32  ;;  %v252_v41 = vmul.f32 %v1182_v45, %v1182_v45  ;;  %v343_v32 = vsel %vm82_vm1, %v250_v53, 0.0 }
  0x56   :  { %v345_v56 = vsel %vm82_vm1, %v251_v52, 0.0  ;;  %v1448_v52 = vld [vmem:[#allocation28_spill] sm:$0xff] }
  0x57   :  { %v169_v1 = vadd.f32 %v1434_v35, %v167_v61  ;;  %v334_v51 = vadd.f32 %v333_v55, %v332_v49  ;;  %v1441_v61 = vld [vmem:[#allocation19_spill] sm:$0xff]  ;;  %v347_v4 = vsel %vm82_vm1, %v252_v41, 0.0  ;;  %v1450_v41 = vld [vmem:[#allocation33_spill] sm:$0xff] }
  0x59   :  { %v171_v44 = vadd.f32 %v1436_v50, %v169_v1  ;;  %v336_v43 = vadd.f32 %v335_v38, %v334_v51  ;;  %v1443_v1 = vld [vmem:[#allocation21_spill] sm:$0xff]  ;;  %v1445_v50 = vld [vmem:[#allocation23_spill] sm:$0xff] }
  0x5b   :  { %v173_v2 = vadd.f32 %v1438_v7, %v171_v44  ;;  %v338_v24 = vadd.f32 %v337_v59, %v336_v43  ;;  %v1447_v7 = vld [vmem:[#allocation27_spill] sm:$0xff] }
  0x5d   :  { %v175_v26 = vadd.f32 %v1439_v57, %v173_v2  ;;  %v340_v39 = vadd.f32 %v339_v62, %v338_v24 }
  0x5f   :  { %v177_v31 = vadd.f32 %v1440_v58, %v175_v26  ;;  %v342_v55 = vadd.f32 %v341_v15, %v340_v39  ;;  %v1449_v26 = vld [vmem:[#allocation29_spill] sm:$0xff]  ;;  %v1451_v58 = vld [vmem:[#allocation34_spill] sm:$0xff] }
  0x61   :  { %v179_v49 = vadd.f32 %v1441_v61, %v177_v31  ;;  %v344_v14 = vadd.f32 %v343_v32, %v342_v55  ;;  %v1452_v55 = vld [vmem:[#allocation35_spill] sm:$0xff]  ;;  %v1453_v61 = vld [vmem:[#allocation37_spill] sm:$0xff] }
  0x63   :  { %v181_v38 = vadd.f32 %v1442_v10, %v179_v49  ;;  %v346_v35 = vadd.f32 %v345_v56, %v344_v14  ;;  %v1454_v14 = vld [vmem:[#allocation38_spill] sm:$0xff]  ;;  %v1455_v10 = vld [vmem:[#allocation39_spill] sm:$0xff] }
  0x65   :  { %v183_v51 = vadd.f32 %v1443_v1, %v181_v38  ;;  %v348_v30 = vadd.f32 %v347_v4, %v346_v35  ;;  %v1456_v35 = vld [vmem:[#allocation40_spill] sm:$0xff] }
  0x67   :  { %v185_v45 = vadd.f32 %v1444_v37, %v183_v51  ;;  %v350_v59 = vadd.f32 %v1084_v63, %v348_v30 }
  0x69   :  { %v187_v44 = vadd.f32 %v1445_v50, %v185_v45  ;;  %v352_v43 = vadd.f32 %v1087_v9, %v350_v59 }
  0x6b   :  { %v189_v53 = vadd.f32 %v1446_v0, %v187_v44  ;;  %v354_v62 = vadd.f32 %v1090_v12, %v352_v43 }
  0x6d   :  { %v191_v2 = vadd.f32 %v1447_v7, %v189_v53  ;;  %v356_v24 = vadd.f32 %v1093_v25, %v354_v62 }
  0x6f   :  { %v193_v15 = vadd.f32 %v1448_v52, %v191_v2  ;;  %v358_v57 = vadd.f32 %v1096_v13, %v356_v24 }
  0x71   :  { %v195_v39 = vadd.f32 %v1449_v26, %v193_v15  ;;  %v360_v63 = vadd.f32 %v1100_v8, %v358_v57  ;;  %v219_v15 = vld [vmem:[#allocation3] sm:$0x1] }
  0x73   :  { %v197_v32 = vadd.f32 %v1450_v41, %v195_v39  ;;  %v362_v9 = vadd.f32 %v1103_v11, %v360_v63 }
  0x75   :  { %v199_v31 = vadd.f32 %v1451_v58, %v197_v32  ;;  %v364_v12 = vadd.f32 %v1106_v17, %v362_v9 }
  0x77   :  { %v201_v56 = vadd.f32 %v1452_v55, %v199_v31  ;;  %v366_v25 = vadd.f32 %v1109_v19, %v364_v12 }
  0x79   :  { %v203_v49 = vadd.f32 %v1453_v61, %v201_v56  ;;  %v368_v13 = vadd.f32 %v1112_v20, %v366_v25 }
  0x7b   :  { %v205_v4 = vadd.f32 %v1454_v14, %v203_v49  ;;  %v370_v8 = vadd.f32 %v1115_v21, %v368_v13 }
  0x7d   :  { %v207_v38 = vadd.f32 %v1455_v10, %v205_v4  ;;  %v372_v11 = vadd.f32 %v1119_v18, %v370_v8  ;;  %v81_v18 = vld [vmem:[#allocation2] sm:$0x1] }
  0x7f   :  { %v209_v1 = vadd.f32 %v1456_v35, %v207_v38  ;;  %v374_v17 = vadd.f32 %v1122_v36, %v372_v11 }
  0x81   :  { %v210_v51 = vrot.slane %v209_v1, 4  ;;  %v376_v30 = vadd.f32 %v1125_v27, %v374_v17 }
  0x83   :  { %v211_v19 = vadd.f32 %v210_v51, %v209_v1  ;;  %v378_v37 = vadd.f32 %v1128_v28, %v376_v30 }
  0x85   :  { %v212_v45 = vrot.slane %v211_v19, 2  ;;  %v380_v20 = vadd.f32 %v1131_v29, %v378_v37 }
  0x87   :  { %v213_v59 = vadd.f32 %v212_v45, %v211_v19  ;;  %v382_v21 = vadd.f32 %v1134_v33, %v380_v20 }
  0x89   :  { %v214_v50 = vrot.slane %v213_v59, 1  ;;  %v384_v44 = vadd.f32 %v1138_v40, %v382_v21 }
  0x8b   :  { %v215_v43 = vadd.f32 %v214_v50, %v213_v59  ;;  %v386_v0 = vadd.f32 %v1141_v42, %v384_v44 }
  0x8d   :  { %v216_v36 = vadd.f32 %v215_v43, %v81_v18  ;;  %v388_v53 = vadd.f32 %v1144_v46, %v386_v0 }
  0x8f   :  { %218 = vst.msk [vmem:[#allocation2] sm:$0x1] %vm14_vm0, %v216_v36  ;;  %v390_v27 = vadd.f32 %v1147_v47, %v388_v53 }
  0x91   :  { %v392_v28 = vadd.f32 %v1150_v6, %v390_v27 }
  0x93   :  { %v394_v29 = vadd.f32 %v1153_v48, %v392_v28 }
  0x95   :  { %v396_v33 = vadd.f32 %v1162_v54, %v394_v29 }
  0x96   :  { %v422_v62 = vld [vmem:[#allocation2] sm:$0x1] }
  0x97   :  { %v398_v40 = vadd.f32 %v1165_v3, %v396_v33  ;;  %v423_v7 = vmul.f32 0.001953125, %v422_v62 }
  0x99   :  { %v400_v2 = vadd.f32 %v1168_v60, %v398_v40  ;;  %429 = vst.msk [vmem:[%s1327_s1] sm:$0x1] %vm14_vm0, %v423_v7  ;;  %v426_v39 = vmul.f32 %v423_v7, %v423_v7 }
  0x9b   :  { %v402_v42 = vadd.f32 %v1171_v16, %v400_v2 }
  0x9d   :  { %v404_v46 = vadd.f32 %v1174_v22, %v402_v42 }
  0x9f   :  { %v406_v47 = vadd.f32 %v1177_v23, %v404_v46 }
  0xa1   :  { %v408_v6 = vadd.f32 %v1186_v5, %v406_v47 }
  0xa3   :  { %v410_v48 = vadd.f32 %v1189_v34, %v408_v6 }
  0xa5   :  { %v411_v54 = vrot.slane %v410_v48, 4 }
  0xa7   :  { %v412_v3 = vadd.f32 %v411_v54, %v410_v48 }
  0xa9   :  { %v413_v24 = vrot.slane %v412_v3, 2 }
  0xab   :  { %v414_v52 = vadd.f32 %v413_v24, %v412_v3 }
  0xad   :  { %v415_v60 = vrot.slane %v414_v52, 1 }
  0xaf   :  { %v416_v57 = vadd.f32 %v415_v60, %v414_v52 }
  0xb1   :  { %v417_v26 = vadd.f32 %v416_v57, %v219_v15 }
  0xb3   :  { %418 = vst.msk [vmem:[#allocation3] sm:$0x1] %vm14_vm0, %v417_v26 }
  0xba   :  { %v424_v16 = vld [vmem:[#allocation3] sm:$0x1] }
  0xbb   :  { %v425_v63 = vmul.f32 0.001953125, %v424_v16 }
  0xbd   :  { %v427_v22 = vsub.f32 %v425_v63, %v426_v39 }
  0xbf   :  { %v428_v41 = vmax.f32 %v427_v22, 0.0 }
  0xc1   :  { %v430_v23 = vadd.f32 1e-05, %v428_v41 }
  0xc3   :  { %442 = vrsqrt.f32 %v430_v23 }
  0xd0   :  { %v443_v5 = vpop.eup %442 }
  0xd1   :  { %432 = vst.msk [vmem:[%s1328_s2] sm:$0x1] %vm14_vm0, %v443_v5 }

// kernel: basic_block_forward.3
= control target key start
LH: loop header
LB: loop body
LE: loop exit
PB: predicated region body
PF: predicated region fallthrough
CT: control target
= control target key end

     0   :  { %s1835_s12 = smov 0   ;;  %s1837_s13 = smov 0   ;;  %s2247_s0 = inlined_call_operand.vmem [shape: bf16[2,4,9,9,4], index: 0, kind: input, shape index: {}]   ;;  %s2248_s1 = inlined_call_operand.vmem [shape: f32[1,4], index: 1, kind: input, shape index: {}]   ;;  %s2249_s2 = inlined_call_operand.vmem [shape: bf16[40,8], index: 2, kind: input, shape index: {}]   ;;  %s2250_s3 = inlined_call_operand.vmem [shape: f32[2,64,8], index: 3, kind: output, shape index: {}]  }
   0x1   :  { %s1839_s14 = smov 0  }
   0x2 LB: > { %s25_s15 = sadd.s32 1, %s1800_s13  ;;  %p1470_p0 = scmp.ge.s32.totalorder %s1804_s14, 1  ;;  %s1804_s14 = sphi %s1839_s14, %s13_s14   ;;  %s1800_s13 = sphi %s1837_s13, %s2252_s13   ;;  %s1796_s12 = sphi %s1835_s12, %s2251_s12  }
   0x3   : > { %p27_p1 = scmp.ge.s32.totalorder %s25_s15, 2  ;;  %p151_p2 = scmp.lt.s32.totalorder %s1804_s14, 3 }
   0x5   : > { %s2254_s15 = smov (%p27_p1, %s25_s15), 0  ;;  %p152_p3 = pnand %p1470_p0, %p151_p2 }
   0x6   : > { %p179_p4 = scmp.lt.s32.totalorder (!%p152_p3), %s1796_s12, 1  ;;  %s1806_s22 = smov (!%p152_p3), 4  }
   0x7   : > { %155 = sbr.rel (%p152_p3) target bundleno = 497 (0x1f1), region = 32  ;;  %s1807_s23 = smov (!%p152_p3), 8  }
   0x8   : > { %s1808_s24 = smov (!%p152_p3), 12   ;;  %s1809_s25 = smov (!%p152_p3), 16  }
   0x9   : > { %s1810_s26 = smov (!%p152_p3), 20   ;;  %s1811_s27 = smov (!%p152_p3), 24  }
   0xa   : > { %s1812_s28 = smov (!%p152_p3), 28   ;;  %s1813_s29 = smov (!%p152_p3), 32  }
   0xb   : > { %s1814_s9 = smov (!%p152_p3), 36  }
   0xc   : > { %s2256_s12 = smov (!%p179_p4, %s1796_s12), 1  ;;  %v1864_v0 = vld [vmem:[%s2248_s1] ss:$0 sm:$0xff]  ;;  %vm278_vm0 = vcmask 31744   ;;  %vm280_vm1 = vcmask 24576   ;;  %vm620_vm2 = vcmask 27648  }
   0xd   : > { %s1740_s16 = smul.u32 288, %s2256_s12  ;;  %vm685_vm3 = vcmask 60448   ;;  %vm750_vm4 = vcmask 93248   ;;  %vm1293_vm5 = vcmask 1043456   ;;  %vm815_vm6 = vcmask 126048  }
   0xe   : > { %vm880_vm7 = vcmask 158848   ;;  %vm945_vm8 = vcmask 191648   ;;  %vm1011_vm9 = vcmask 224448   ;;  %vm1077_vm10 = vcmask 257248  }
   0xf   : > { %s1859_s19 = scalar_lea.vmem %s2247_s0, %s1740_s16  ;;  %vm1142_vm11 = vcmask 290048   ;;  %vm1223_vm12 = vcmask 322848   ;;  %vm1280_vm13 = vcmask 326656   ;;  %s1630_s16 = sshll.u32 %s2256_s12, 6  ;;  %vm1362_vm14 = vcmask 64512  }
  0x10   : > { %v1483_v1 = vld [vmem:[%s1859_s19 + $0x68] ss:$8 sps:$4 sm:$0xff]   ;;  %v1481_v3 = vld [vmem:[%s1859_s19 + $0x58] ss:$8 sps:$4 sm:$0xff]   ;;  %v209_v14 = vld [vmem:[%s1859_s19 + $0xc] sm:$0x1] }
  0x11   : > { %v1475_v2 = vld [vmem:[%s1859_s19 + $0x48] ss:$8 sps:$4 sm:$0xff]   ;;  %v327_v4 = vunpack.c.l.bf16 %v1483_v1  ;;  %v329_v6 = vunpack.c.h.bf16 %v1483_v1  ;;  %v1489_v8 = vld [vmem:[%s1859_s19 + $0x78] ss:$8 sps:$4 sm:$0xff]   ;;  %v325_v9 = vunpack.c.h.bf16 %v1481_v3  ;;  %v323_v10 = vunpack.c.l.bf16 %v1481_v3  ;;  %v207_v53 = vld [vmem:[%s1859_s19 + $0x4] sm:$0x1] }
  0x12   : > { %v319_v5 = vunpack.c.l.bf16 %v1475_v2  ;;  %v321_v7 = vunpack.c.h.bf16 %v1475_v2  ;;  %v333_v11 = vunpack.c.h.bf16 %v1489_v8  ;;  %v331_v12 = vunpack.c.l.bf16 %v1489_v8  ;;  %v1871_v13 = vld [vmem:[%s1859_s19] ss:$8 sps:$4 sm:$0xff]   ;;  %v217_v57 = vld [vmem:[%s1859_s19 + $0x2c] sm:$0x1]  ;;  %v215_v58 = vld [vmem:[%s1859_s19 + $0x24] sm:$0x1] }
  0x13   : > { %v345_v15 = vmul.f32 %v1864_v0, %v327_v4  ;;  %v347_v17 = vmul.f32 %v1864_v0, %v329_v6  ;;  %v343_v19 = vmul.f32 %v1864_v0, %v325_v9  ;;  %v341_v20 = vmul.f32 %v1864_v0, %v323_v10  ;;  %v216_v55 = vld [vmem:[%s1859_s19 + $0x20] ss:$8 sps:$4 sm:$0xff]   ;;  %v212_v59 = vld [vmem:[%s1859_s19 + $0x10] ss:$8 sps:$4 sm:$0xff]   ;;  %v213_v60 = vld [vmem:[%s1859_s19 + $0x1c] sm:$0x1] }
  0x14   : > { %v337_v16 = vmul.f32 %v1864_v0, %v319_v5  ;;  %v339_v18 = vmul.f32 %v1864_v0, %v321_v7  ;;  %v351_v21 = vmul.f32 %v1864_v0, %v333_v11  ;;  %v349_v22 = vmul.f32 %v1864_v0, %v331_v12 }
  0x15   : > { %v363_v23 = vmax.f32 %v345_v15, 0.0  ;;  %v365_v25 = vmax.f32 %v347_v17, 0.0  ;;  %v361_v27 = vmax.f32 %v343_v19, 0.0  ;;  %v359_v28 = vmax.f32 %v341_v20, 0.0  ;;  %v220_v15 = vld [vmem:[%s1859_s19 + $0x30] ss:$8 sps:$4 sm:$0xff]  }
  0x16   : > { %v355_v24 = vmax.f32 %v337_v16, 0.0  ;;  %v357_v26 = vmax.f32 %v339_v18, 0.0  ;;  %v369_v29 = vmax.f32 %v351_v21, 0.0  ;;  %v367_v30 = vmax.f32 %v349_v22, 0.0  ;;  %v221_v16 = vld [vmem:[%s1859_s19 + $0x3c] sm:$0x1] }
  0x17   : > { %382 = vst.msk [vmem:[#allocation2 + $0xd0] sm:$0xff] %vm278_vm0, %v363_v23  ;;  %384 = vst.msk [vmem:[#allocation2 + $0xe0] sm:$0xff] %vm278_vm0, %v365_v25  ;;  %v226_v31 = vunpack.c.h.bf16 %v1871_v13  ;;  %v227_v32 = vunpack.c.l.bf16 %v209_v14  ;;  %v224_v54 = vunpack.c.l.bf16 %v1871_v13  ;;  %v225_v62 = vunpack.c.l.bf16 %v207_v53  ;;  %v211_v14 = vld [vmem:[%s1859_s19 + $0x14] sm:$0x1]  ;;  %v1495_v22 = vld [vmem:[%s1859_s19 + $0x90] ss:$8 sps:$4 sm:$0xff]  }
  0x18   : > { %374 = vst.msk [vmem:[#allocation2 + $0x90] sm:$0xff] %vm278_vm0, %v355_v24  ;;  %376 = vst.msk [vmem:[#allocation2 + $0xa0] sm:$0xff] %vm278_vm0, %v357_v26  ;;  %v234_v1 = vunpack.c.h.bf16 %v216_v55  ;;  %v235_v2 = vunpack.c.l.bf16 %v217_v57  ;;  %v232_v3 = vunpack.c.l.bf16 %v216_v55  ;;  %v233_v4 = vunpack.c.l.bf16 %v215_v58  ;;  %v219_v21 = vld [vmem:[%s1859_s19 + $0x34] sm:$0x1]  ;;  %v1513_v57 = vld [vmem:[%s1859_s19 + $0xd8] ss:$8 sps:$4 sm:$0xff]  }
  0x19   : > { %380 = vst.msk [vmem:[#allocation2 + $0xc0] sm:$0xff] %vm278_vm0, %v361_v27  ;;  %378 = vst.msk [vmem:[#allocation2 + $0xb0] sm:$0xff] %vm278_vm0, %v359_v28  ;;  %v244_v33 = vmul.f32 %v1864_v0, %v226_v31  ;;  %v245_v34 = vmul.f32 %v1864_v0, %v227_v32  ;;  %v242_v63 = vmul.f32 %v1864_v0, %v224_v54  ;;  %v230_v5 = vunpack.c.h.bf16 %v212_v59 }
  0x1a   : > { %388 = vst.msk [vmem:[#allocation2 + $0x100] sm:$0xff] %vm278_vm0, %v369_v29  ;;  %386 = vst.msk [vmem:[#allocation2 + $0xf0] sm:$0xff] %vm278_vm0, %v367_v30  ;;  %v243_v6 = vmul.f32 %v1864_v0, %v225_v62  ;;  %v252_v8 = vmul.f32 %v1864_v0, %v234_v1  ;;  %v231_v9 = vunpack.c.l.bf16 %v213_v60  ;;  %v253_v10 = vmul.f32 %v1864_v0, %v235_v2 }
  0x1b   : > { %v262_v35 = vmax.f32 %v244_v33, 0.0  ;;  %v263_v36 = vmax.f32 %v245_v34, 0.0  ;;  %v260_v7 = vmax.f32 %v242_v63, 0.0  ;;  %v250_v11 = vmul.f32 %v1864_v0, %v232_v3 }
  0x1c   : > { %v251_v12 = vmul.f32 %v1864_v0, %v233_v4  ;;  %v248_v13 = vmul.f32 %v1864_v0, %v230_v5  ;;  %v261_v17 = vmax.f32 %v243_v6, 0.0  ;;  %v270_v18 = vmax.f32 %v252_v8, 0.0 }
  0x1d   : > { %282 = vst.msk [vmem:[#allocation2 + $0x10] sm:$0xff] %vm278_vm0, %v262_v35  ;;  %279 = vst.msk [vmem:[#allocation2] sm:$0xff] %vm278_vm0, %v260_v7  ;;  %v249_v19 = vmul.f32 %v1864_v0, %v231_v9  ;;  %v228_v20 = vunpack.c.l.bf16 %v212_v59  ;;  %v271_v23 = vmax.f32 %v253_v10, 0.0  ;;  %v268_v24 = vmax.f32 %v250_v11, 0.0  ;;  %v1503_v35 = vld [vmem:[%s1859_s19 + $0xb0] ss:$8 sps:$4 sm:$0xff]  }
  0x1e   : > { %283 = vst.msk [vmem:[#allocation2 + $0x18] sm:$0x1] %vm280_vm1, %v263_v36  ;;  %v633_v37 = vld [vmem:[#allocation2 + $0xd0] sm:$0xff]  ;;  %v634_v39 = vld [vmem:[#allocation2 + $0xe0] sm:$0xff]  ;;  %v269_v25 = vmax.f32 %v251_v12, 0.0  ;;  %v266_v26 = vmax.f32 %v248_v13, 0.0  ;;  %v229_v28 = vunpack.c.l.bf16 %v211_v14  ;;  %v238_v30 = vunpack.c.h.bf16 %v220_v15 }
  0x1f   : > { %v629_v38 = vld [vmem:[#allocation2 + $0x90] sm:$0xff]  ;;  %v1895_v40 = vpack.c.bf16 %v633_v37, %v633_v37  ;;  %v1897_v42 = vpack.c.bf16 %v634_v39, %v634_v39  ;;  %v630_v43 = vld [vmem:[#allocation2 + $0xa0] sm:$0xff]  ;;  %281 = vst.msk [vmem:[#allocation2 + $0x8] sm:$0x1] %vm280_vm1, %v261_v17  ;;  %v267_v27 = vmax.f32 %v249_v19, 0.0  ;;  %v246_v29 = vmul.f32 %v1864_v0, %v228_v20 }
  0x20   : > { %v1639_v41 = vpack.c.bf16 %v629_v38, %v629_v38  ;;  %v632_v44 = vld [vmem:[#allocation2 + $0xc0] sm:$0xff]  ;;  %v631_v45 = vld [vmem:[#allocation2 + $0xb0] sm:$0xff]  ;;  %v1899_v46 = vpack.c.bf16 %v630_v43, %v630_v43  ;;  %290 = vst.msk [vmem:[#allocation2 + $0x50] sm:$0xff] %vm278_vm0, %v270_v18  ;;  %288 = vst.msk [vmem:[#allocation2 + $0x40] sm:$0xff] %vm278_vm0, %v268_v24  ;;  %v239_v31 = vunpack.c.l.bf16 %v221_v16  ;;  %v236_v32 = vunpack.c.l.bf16 %v220_v15 }
  0x21   : > { %v1901_v47 = vpack.c.bf16 %v632_v44, %v632_v44  ;;  %v1903_v48 = vpack.c.bf16 %v631_v45, %v631_v45  ;;  %v636_v49 = vld [vmem:[#allocation2 + $0x100] sm:$0xff]  ;;  %v635_v50 = vld [vmem:[#allocation2 + $0xf0] sm:$0xff]  ;;  %669 = vrot.lane.b32.xlu1 %v1895_v40, %s1806_s22  ;;  %291 = vst.msk [vmem:[#allocation2 + $0x58] sm:$0x1] %vm280_vm1, %v271_v23  ;;  %289 = vst.msk [vmem:[#allocation2 + $0x48] sm:$0x1] %vm280_vm1, %v269_v25  ;;  %v237_v33 = vunpack.c.l.bf16 %v219_v21  ;;  %v415_v34 = vunpack.c.h.bf16 %v1495_v22 }
  0x22   : > { %661 = vrot.lane.b32.xlu0 %v1639_v41, %s1806_s22  ;;  %v1908_v51 = vpack.c.bf16 %v636_v49, %v636_v49  ;;  %v1910_v52 = vpack.c.bf16 %v635_v50, %v635_v50  ;;  %286 = vst.msk [vmem:[#allocation2 + $0x30] sm:$0xff] %vm278_vm0, %v266_v26  ;;  %v247_v36 = vmul.f32 %v1864_v0, %v229_v28  ;;  %v264_v37 = vmax.f32 %v246_v29, 0.0  ;;  %v1499_v49 = vld [vmem:[%s1859_s19 + $0xa0] ss:$8 sps:$4 sm:$0xff]  }
  0x23   : > { %287 = vst.msk [vmem:[#allocation2 + $0x38] sm:$0x1] %vm280_vm1, %v267_v27  ;;  %v256_v38 = vmul.f32 %v1864_v0, %v238_v30  ;;  %v413_v39 = vunpack.c.l.bf16 %v1495_v22  ;;  %v257_v41 = vmul.f32 %v1864_v0, %v239_v31  ;;  %v254_v43 = vmul.f32 %v1864_v0, %v236_v32  ;;  %v1521_v20 = vld [vmem:[%s1859_s19 + $0xf8] ss:$8 sps:$4 sm:$0xff]   ;;  %v1517_v21 = vld [vmem:[%s1859_s19 + $0xe8] ss:$8 sps:$4 sm:$0xff]  }
  0x24   : > { %v255_v44 = vmul.f32 %v1864_v0, %v237_v33  ;;  %v433_v45 = vmul.f32 %v1864_v0, %v415_v34  ;;  %v265_v50 = vmax.f32 %v247_v36, 0.0  ;;  %284 = vst.msk [vmem:[#allocation2 + $0x20] sm:$0xff] %vm278_vm0, %v264_v37  ;;  %v423_v55 = vunpack.c.h.bf16 %v1503_v35  ;;  %v1525_v26 = vld [vmem:[%s1859_s19 + $0x108] ss:$8 sps:$4 sm:$0xff]  }
  0x25   : > { %671 = vrot.lane.b32.xlu1 %v1897_v42, %s1806_s22  ;;  %v695_v56 = vld [vmem:[#allocation2 + $0x11] sm:$0xff]  ;;  %v274_v53 = vmax.f32 %v256_v38, 0.0  ;;  %v431_v54 = vmul.f32 %v1864_v0, %v413_v39  ;;  %v275_v58 = vmax.f32 %v257_v41, 0.0  ;;  %v272_v59 = vmax.f32 %v254_v43, 0.0  ;;  %v1496_v41 = vld [vmem:[%s1859_s19 + $0x9c] sm:$0x1] }
  0x26   : > { %663 = vrot.lane.b32.xlu0 %v1899_v46, %s1806_s22  ;;  %v1927_v61 = vpack.c.bf16 %v695_v56, %v695_v56  ;;  %v1507_v56 = vld [vmem:[%s1859_s19 + $0xc0] ss:$8 sps:$4 sm:$0xff]   ;;  %v273_v60 = vmax.f32 %v255_v44, 0.0  ;;  %v451_v62 = vmax.f32 %v433_v45, 0.0  ;;  %285 = vst.msk [vmem:[#allocation2 + $0x28] sm:$0x1] %vm280_vm1, %v265_v50  ;;  %v441_v1 = vmul.f32 %v1864_v0, %v423_v55 }
  0x27   : > { %294 = vst.msk [vmem:[#allocation2 + $0x70] sm:$0xff] %vm278_vm0, %v274_v53  ;;  %v449_v63 = vmax.f32 %v431_v54, 0.0  ;;  %v421_v2 = vunpack.c.l.bf16 %v1503_v35  ;;  %v419_v3 = vunpack.c.h.bf16 %v1499_v49  ;;  %v694_v4 = vld [vmem:[#allocation2 + $0x1] sm:$0xff]  ;;  %292 = vst.msk [vmem:[#allocation2 + $0x60] sm:$0xff] %vm278_vm0, %v272_v59  ;;  %v417_v5 = vunpack.c.l.bf16 %v1499_v49  ;;  %v1494_v54 = vld [vmem:[%s1859_s19 + $0x94] sm:$0x1] }
  0x28   : > { %295 = vst.msk [vmem:[#allocation2 + $0x78] sm:$0x1] %vm280_vm1, %v275_v58  ;;  %293 = vst.msk [vmem:[#allocation2 + $0x68] sm:$0x1] %vm280_vm1, %v273_v60  ;;  %v427_v6 = vunpack.c.h.bf16 %v1507_v56  ;;  %v425_v7 = vunpack.c.l.bf16 %v1507_v56  ;;  %v509_v8 = vunpack.c.h.bf16 %v1513_v57  ;;  %v1647_v9 = vpack.c.bf16 %v694_v4, %v694_v4  ;;  %v699_v10 = vld [vmem:[#allocation2 + $0x51] sm:$0xff]  ;;  %v698_v11 = vld [vmem:[#allocation2 + $0x41] sm:$0xff] }
  0x29   : > { %667 = vrot.lane.b32.xlu1 %v1901_v47, %s1806_s22  ;;  %470 = vst.msk [vmem:[#allocation2 + $0x130] sm:$0xff] %vm278_vm0, %v451_v62  ;;  %468 = vst.msk [vmem:[#allocation2 + $0x120] sm:$0xff] %vm278_vm0, %v449_v63  ;;  %v459_v12 = vmax.f32 %v441_v1, 0.0  ;;  %v439_v13 = vmul.f32 %v1864_v0, %v421_v2  ;;  %v437_v14 = vmul.f32 %v1864_v0, %v419_v3  ;;  %v507_v30 = vunpack.c.l.bf16 %v1513_v57  ;;  %v1504_v58 = vld [vmem:[%s1859_s19 + $0xbc] sm:$0x1] }
  0x2a   : > { %665 = vrot.lane.b32.xlu0 %v1903_v48, %s1806_s22  ;;  %v1979_v15 = vpack.c.bf16 %v699_v10, %v699_v10  ;;  %v1981_v16 = vpack.c.bf16 %v698_v11, %v698_v11  ;;  %v697_v17 = vld [vmem:[#allocation2 + $0x31] sm:$0xff]  ;;  %v435_v18 = vmul.f32 %v1864_v0, %v417_v5  ;;  %v445_v19 = vmul.f32 %v1864_v0, %v427_v6 }
  0x2b   : > { %v1988_v22 = vpack.c.bf16 %v697_v17, %v697_v17  ;;  %478 = vst.msk [vmem:[#allocation2 + $0x170] sm:$0xff] %vm278_vm0, %v459_v12  ;;  %v457_v23 = vmax.f32 %v439_v13, 0.0  ;;  %v455_v24 = vmax.f32 %v437_v14, 0.0  ;;  %v443_v25 = vmul.f32 %v1864_v0, %v425_v7  ;;  %v1502_v59 = vld [vmem:[%s1859_s19 + $0xb4] sm:$0x1] }
  0x2c   : > { %v453_v27 = vmax.f32 %v435_v18, 0.0  ;;  %v463_v28 = vmax.f32 %v445_v19, 0.0  ;;  %v527_v29 = vmul.f32 %v1864_v0, %v509_v8  ;;  %v517_v32 = vunpack.c.h.bf16 %v1521_v20  ;;  %v1500_v17 = vld [vmem:[%s1859_s19 + $0xac] sm:$0x1] }
  0x2d   : > { %675 = vrot.lane.b32.xlu1 %v1908_v51, %s1806_s22  ;;  %476 = vst.msk [vmem:[#allocation2 + $0x160] sm:$0xff] %vm278_vm0, %v457_v23  ;;  %474 = vst.msk [vmem:[#allocation2 + $0x150] sm:$0xff] %vm278_vm0, %v455_v24  ;;  %v461_v31 = vmax.f32 %v443_v25, 0.0  ;;  %v515_v33 = vunpack.c.l.bf16 %v1521_v20  ;;  %v513_v34 = vunpack.c.h.bf16 %v1517_v21  ;;  %v696_v35 = vld [vmem:[#allocation2 + $0x21] sm:$0xff]  ;;  %v525_v37 = vmul.f32 %v1864_v0, %v507_v30  ;;  %v1508_v23 = vld [vmem:[%s1859_s19 + $0xcc] sm:$0x1] }
  0x2e   : > { %673 = vrot.lane.b32.xlu0 %v1910_v52, %s1806_s22  ;;  %472 = vst.msk [vmem:[#allocation2 + $0x140] sm:$0xff] %vm278_vm0, %v453_v27  ;;  %482 = vst.msk [vmem:[#allocation2 + $0x190] sm:$0xff] %vm278_vm0, %v463_v28  ;;  %v545_v36 = vmax.f32 %v527_v29, 0.0  ;;  %v511_v38 = vunpack.c.l.bf16 %v1517_v21  ;;  %v521_v39 = vunpack.c.h.bf16 %v1525_v26  ;;  %v2004_v43 = vpack.c.bf16 %v696_v35, %v696_v35  ;;  %v1498_v21 = vld [vmem:[%s1859_s19 + $0xa4] sm:$0x1] }
  0x2f   : > { %v701_v44 = vld [vmem:[#allocation2 + $0x71] sm:$0xff]  ;;  %v700_v45 = vld [vmem:[#allocation2 + $0x61] sm:$0xff]  ;;  %480 = vst.msk [vmem:[#allocation2 + $0x180] sm:$0xff] %vm278_vm0, %v461_v31  ;;  %v535_v49 = vmul.f32 %v1864_v0, %v517_v32  ;;  %v533_v50 = vmul.f32 %v1864_v0, %v515_v33  ;;  %v531_v53 = vmul.f32 %v1864_v0, %v513_v34  ;;  %v543_v57 = vmax.f32 %v525_v37, 0.0 }
  0x30   : > { %v2013_v55 = vpack.c.bf16 %v701_v44, %v701_v44  ;;  %v760_v56 = vld [vmem:[#allocation2 + $0x130] sm:$0xff]  ;;  %564 = vst.msk [vmem:[#allocation2 + $0x1c0] sm:$0xff] %vm278_vm0, %v545_v36  ;;  %v2018_v60 = vpack.c.bf16 %v700_v45, %v700_v45  ;;  %v529_v2 = vmul.f32 %v1864_v0, %v511_v38  ;;  %v539_v3 = vmul.f32 %v1864_v0, %v521_v39  ;;  %v759_v10 = vld [vmem:[#allocation2 + $0x120] sm:$0xff] }
  0x31   : > { %728 = vrot.lane.b32.xlu1 %v1927_v61, %s1807_s23  ;;  %v553_v62 = vmax.f32 %v535_v49, 0.0  ;;  %v551_v63 = vmax.f32 %v533_v50, 0.0  ;;  %v549_v1 = vmax.f32 %v531_v53, 0.0  ;;  %562 = vst.msk [vmem:[#allocation2 + $0x1b0] sm:$0xff] %vm278_vm0, %v543_v57  ;;  %v519_v4 = vunpack.c.l.bf16 %v1525_v26  ;;  %v1506_v26 = vld [vmem:[%s1859_s19 + $0xc4] sm:$0x1] }
  0x32   : > { %726 = vrot.lane.b32.xlu0 %v1647_v9, %s1807_s23  ;;  %v416_v5 = vunpack.c.l.bf16 %v1496_v41  ;;  %v1656_v6 = vpack.c.bf16 %v760_v56, %v760_v56  ;;  %v414_v7 = vunpack.c.l.bf16 %v1494_v54  ;;  %v424_v8 = vunpack.c.l.bf16 %v1504_v58  ;;  %v764_v18 = vld [vmem:[#allocation2 + $0x170] sm:$0xff]  ;;  %v956_v39 = vld [vmem:[#allocation2 + $0x20] sm:$0xff] }
  0x33   : > { %572 = vst.msk [vmem:[#allocation2 + $0x200] sm:$0xff] %vm278_vm0, %v553_v62  ;;  %570 = vst.msk [vmem:[#allocation2 + $0x1f0] sm:$0xff] %vm278_vm0, %v551_v63  ;;  %v422_v9 = vunpack.c.l.bf16 %v1502_v59  ;;  %v547_v11 = vmax.f32 %v529_v2, 0.0  ;;  %v557_v12 = vmax.f32 %v539_v3, 0.0  ;;  %v537_v13 = vmul.f32 %v1864_v0, %v519_v4  ;;  %v955_v41 = vld [vmem:[#allocation2 + $0x10] sm:$0xff]  ;;  %v960_v50 = vld [vmem:[#allocation2 + $0x60] sm:$0xff] }
  0x34   : > { %568 = vst.msk [vmem:[#allocation2 + $0x1e0] sm:$0xff] %vm278_vm0, %v549_v1  ;;  %v434_v14 = vmul.f32 %v1864_v0, %v416_v5  ;;  %v432_v19 = vmul.f32 %v1864_v0, %v414_v7  ;;  %v442_v20 = vmul.f32 %v1864_v0, %v424_v8  ;;  %v1655_v27 = vpack.c.bf16 %v759_v10, %v759_v10  ;;  %v763_v32 = vld [vmem:[#allocation2 + $0x160] sm:$0xff]  ;;  %v762_v33 = vld [vmem:[#allocation2 + $0x150] sm:$0xff] }
  0x35   : > { %736 = vrot.lane.b32.xlu1 %v1979_v15, %s1807_s23  ;;  %566 = vst.msk [vmem:[#allocation2 + $0x1d0] sm:$0xff] %vm278_vm0, %v547_v11  ;;  %576 = vst.msk [vmem:[#allocation2 + $0x220] sm:$0xff] %vm278_vm0, %v557_v12  ;;  %v555_v24 = vmax.f32 %v537_v13, 0.0  ;;  %v440_v30 = vmul.f32 %v1864_v0, %v422_v9  ;;  %v1660_v31 = vpack.c.bf16 %v764_v18, %v764_v18  ;;  %v420_v34 = vunpack.c.l.bf16 %v1500_v17  ;;  %v959_v53 = vld [vmem:[#allocation2 + $0x50] sm:$0xff]  ;;  %v222_v54 = vld [vmem:[%s1859_s19 + $0x40] ss:$72 sps:$4 sm:$0xff]  }
  0x36   : > { %734 = vrot.lane.b32.xlu0 %v1981_v16, %s1807_s23  ;;  %v452_v25 = vmax.f32 %v434_v14, 0.0  ;;  %v450_v28 = vmax.f32 %v432_v19, 0.0  ;;  %v460_v29 = vmax.f32 %v442_v20, 0.0  ;;  %v418_v35 = vunpack.c.l.bf16 %v1498_v21  ;;  %v958_v59 = vld [vmem:[#allocation2 + $0x40] sm:$0xff]  ;;  %v957_v62 = vld [vmem:[#allocation2 + $0x30] sm:$0xff] }
  0x37   : > { %574 = vst.msk [vmem:[#allocation2 + $0x210] sm:$0xff] %vm278_vm0, %v555_v24  ;;  %v428_v36 = vunpack.c.l.bf16 %v1508_v23  ;;  %v458_v37 = vmax.f32 %v440_v30, 0.0  ;;  %v426_v38 = vunpack.c.l.bf16 %v1506_v26  ;;  %v438_v44 = vmul.f32 %v1864_v0, %v420_v34  ;;  %v961_v63 = vld [vmem:[#allocation2 + $0x70] sm:$0xff]  ;;  %v761_v1 = vld [vmem:[#allocation2 + $0x140] sm:$0xff] }
  0x38   : > { %471 = vst.msk [vmem:[#allocation2 + $0x138] sm:$0x1] %vm280_vm1, %v452_v25  ;;  %469 = vst.msk [vmem:[#allocation2 + $0x128] sm:$0x1] %vm280_vm1, %v450_v28  ;;  %v436_v45 = vmul.f32 %v1864_v0, %v418_v35  ;;  %v1659_v56 = vpack.c.bf16 %v763_v32, %v763_v32  ;;  %v1658_v57 = vpack.c.bf16 %v762_v33, %v762_v33  ;;  %v766_v7 = vld [vmem:[#allocation2 + $0x190] sm:$0xff]  ;;  %v240_v17 = vunpack.c.l.bf16 %v222_v54  ;;  %v765_v24 = vld [vmem:[#allocation2 + $0x180] sm:$0xff] }
  0x39   : > { %732 = vrot.lane.b32.xlu1 %v1988_v22, %s1807_s23  ;;  %479 = vst.msk [vmem:[#allocation2 + $0x178] sm:$0x1] %vm280_vm1, %v460_v29  ;;  %v446_v49 = vmul.f32 %v1864_v0, %v428_v36  ;;  %477 = vst.msk [vmem:[#allocation2 + $0x168] sm:$0x1] %vm280_vm1, %v458_v37  ;;  %v444_v58 = vmul.f32 %v1864_v0, %v426_v38  ;;  %v456_v2 = vmax.f32 %v438_v44, 0.0  ;;  %v335_v20 = vunpack.c.h.bf16 %v222_v54  ;;  %v824_v34 = vld [vmem:[#allocation2 + $0x1b0] sm:$0xff] }
  0x3a   : > { %730 = vrot.lane.b32.xlu0 %v2004_v43, %s1807_s23  ;;  %v454_v3 = vmax.f32 %v436_v45, 0.0  ;;  %v2056_v5 = vpack.c.bf16 %v956_v39, %v956_v39  ;;  %v2058_v9 = vpack.c.bf16 %v955_v41, %v955_v41  ;;  %v2060_v10 = vpack.c.bf16 %v960_v50, %v960_v50  ;;  %v223_v12 = vld [vmem:[%s1859_s19 + $0x44] sm:$0x1]  ;;  %v828_v38 = vld [vmem:[#allocation2 + $0x1f0] sm:$0xff] }
  0x3b   : > { %v464_v4 = vmax.f32 %v446_v49, 0.0  ;;  %v462_v8 = vmax.f32 %v444_v58, 0.0  ;;  %v2062_v11 = vpack.c.bf16 %v959_v53, %v959_v53  ;;  %475 = vst.msk [vmem:[#allocation2 + $0x158] sm:$0x1] %vm280_vm1, %v456_v2  ;;  %v2068_v13 = vpack.c.bf16 %v958_v59, %v958_v59  ;;  %v829_v36 = vld [vmem:[#allocation2 + $0x200] sm:$0xff] }
  0x3c   : > { %473 = vst.msk [vmem:[#allocation2 + $0x148] sm:$0x1] %vm280_vm1, %v454_v3  ;;  %v2070_v14 = vpack.c.bf16 %v957_v62, %v957_v62  ;;  %v2072_v18 = vpack.c.bf16 %v961_v63, %v961_v63  ;;  %v1657_v19 = vpack.c.bf16 %v761_v1, %v761_v1  ;;  %v1662_v23 = vpack.c.bf16 %v766_v7, %v766_v7  ;;  %v827_v39 = vld [vmem:[#allocation2 + $0x1e0] sm:$0xff]  ;;  %v826_v45 = vld [vmem:[#allocation2 + $0x1d0] sm:$0xff] }
  0x3d   : > { %740 = vrot.lane.b32.xlu1 %v2013_v55, %s1807_s23  ;;  %483 = vst.msk [vmem:[#allocation2 + $0x198] sm:$0x1] %vm280_vm1, %v464_v4  ;;  %481 = vst.msk [vmem:[#allocation2 + $0x188] sm:$0x1] %vm280_vm1, %v462_v8  ;;  %v258_v25 = vmul.f32 %v1864_v0, %v240_v17  ;;  %v241_v26 = vunpack.c.l.bf16 %v223_v12  ;;  %v353_v28 = vmul.f32 %v1864_v0, %v335_v20  ;;  %v831_v49 = vld [vmem:[#allocation2 + $0x220] sm:$0xff] }
  0x3e   : > { %738 = vrot.lane.b32.xlu0 %v2018_v60, %s1807_s23  ;;  %625 = vst.msk [vmem:[#allocation3 + $0x10] sm:$0xf] %vm620_vm2, %v2068_v13  ;;  %626 = vst.msk [vmem:[#allocation3 + $0x14] sm:$0xf] %vm620_vm2, %v2062_v11  ;;  %v1663_v37 = vpack.c.bf16 %v824_v34, %v824_v34  ;;  %v1667_v41 = vpack.c.bf16 %v828_v38, %v828_v38  ;;  %v1666_v44 = vpack.c.bf16 %v827_v39, %v827_v39  ;;  %v830_v54 = vld [vmem:[#allocation2 + $0x210] sm:$0xff]  ;;  %v1775_v34 = vld [vmem:[%s2249_s2 + $0x8] sm:$0xff]  }
  0x3f   : > { %622 = vst.msk [vmem:[#allocation3 + $0x4] sm:$0xf] %vm620_vm2, %v2058_v9  ;;  %624 = vst.msk [vmem:[#allocation3 + $0xc] sm:$0xf] %vm620_vm2, %v2070_v14  ;;  %v276_v29 = vmax.f32 %v258_v25, 0.0  ;;  %v259_v30 = vmul.f32 %v1864_v0, %v241_v26  ;;  %v371_v32 = vmax.f32 %v353_v28, 0.0  ;;  %v1668_v0 = vpack.c.bf16 %v829_v36, %v829_v36 }
  0x40   : > { %623 = vst.msk [vmem:[#allocation3 + $0x8] sm:$0xf] %vm620_vm2, %v2056_v5  ;;  %628 = vst.msk [vmem:[#allocation3 + $0x1c] sm:$0xf] %vm620_vm2, %v2072_v18  ;;  %v1665_v50 = vpack.c.bf16 %v826_v45, %v826_v45  ;;  %v1670_v53 = vpack.c.bf16 %v831_v49, %v831_v49  ;;  %v889_v59 = vld [vmem:[#allocation2 + $0x121] sm:$0xff]  ;;  %v894_v62 = vld [vmem:[#allocation2 + $0x171] sm:$0xff] }
  0x41   : > { %793 = vrot.lane.b32.xlu1 %v1656_v6, %s1808_s24  ;;  %v580_v6 = vld [vmem:[#allocation2] sm:$0xff]  ;;  %627 = vst.msk [vmem:[#allocation3 + $0x18] sm:$0xf] %vm620_vm2, %v2060_v10  ;;  %v277_v35 = vmax.f32 %v259_v30, 0.0  ;;  %v1671_v63 = vpack.c.bf16 %v889_v59, %v889_v59  ;;  %v1676_v1 = vpack.c.bf16 %v894_v62, %v894_v62  ;;  %v1604_v26 = vld [vmem:[%s1859_s19 + $0xe8] ss:$8 sps:$4 sm:$0xff]  }
  0x42   : > { %791 = vrot.lane.b32.xlu0 %v1655_v27, %s1808_s24  ;;  %v1631_v21 = vpack.c.bf16 %v580_v6, %v580_v6  ;;  %v825_v27 = vld [vmem:[#allocation2 + $0x1c0] sm:$0xff]  ;;  %296 = vst.msk [vmem:[#allocation2 + $0x80] sm:$0xff] %vm278_vm0, %v276_v29  ;;  %390 = vst.msk [vmem:[#allocation2 + $0x110] sm:$0xff] %vm278_vm0, %v371_v32  ;;  %v892_v3 = vld [vmem:[#allocation2 + $0x151] sm:$0xff] }
  0x43   : > { %v1664_v33 = vpack.c.bf16 %v825_v27, %v825_v27  ;;  %297 = vst.msk [vmem:[#allocation2 + $0x88] sm:$0x1] %vm280_vm1, %v277_v35  ;;  %v893_v2 = vld [vmem:[#allocation2 + $0x161] sm:$0xff]  ;;  %v1674_v6 = vpack.c.bf16 %v892_v3, %v892_v3  ;;  %v1774_v27 = vld [vmem:[%s2249_s2 + $0x10] ss:$0 sps:$4 sm:$0xff]   ;;  %v1161_v35 = vunpack.c.l.bf16 %v1604_v26 }
  0x44   : > { %621 = vst.msk [vmem:[#allocation3] sm:$0xf] %vm620_vm2, %v1631_v21  ;;  %v1675_v4 = vpack.c.bf16 %v893_v2, %v893_v2  ;;  %v891_v7 = vld [vmem:[#allocation2 + $0x141] sm:$0xff]  ;;  %v896_v8 = vld [vmem:[#allocation2 + $0x191] sm:$0xff]  ;;  %1738 = vmatprep.subr.msk.bf16.mxu0 %vm1293_vm5, %v1774_v27  ;;  %v1295_v28 = vsel %vm1293_vm5, %v1774_v27, 0  ;;  %1739 = vmatprep.subr.msk.bf16.mxu1 %vm1293_vm5, %v1774_v27 }
  0x45   : > { %801 = vrot.lane.b32.xlu1 %v1660_v31, %s1808_s24  ;;  %v1661_v31 = vpack.c.bf16 %v765_v24, %v765_v24  ;;  %v1673_v12 = vpack.c.bf16 %v891_v7, %v891_v7  ;;  %v1678_v17 = vpack.c.bf16 %v896_v8, %v896_v8  ;;  %1719 = vmatpush3.bf16.msra.mxu0 %v1295_v28  ;;  %v1777_v39 = vld [vmem:[%s2249_s2] sm:$0xff]  }
  0x46   : > { %799 = vrot.lane.b32.xlu0 %v1659_v56, %s1808_s24  ;;  %v890_v56 = vld [vmem:[#allocation2 + $0x131] sm:$0xff]  ;;  %1735 = vmatpush3.bf16.msra.mxu1 %v1295_v28 }
  0x47   : > { %v1672_v58 = vpack.c.bf16 %v890_v56, %v890_v56  ;;  %1720 = vmatprep.subr.bf16.mxu0 %v1775_v34  ;;  %1733 = vmatprep.subr.bf16.mxu1 %v1775_v34 }
  0x49   : > { %797 = vrot.lane.b32.xlu1 %v1658_v57, %s1808_s24  ;;  %v1669_v57 = vpack.c.bf16 %v830_v54, %v830_v54  ;;  %v962_v21 = vld [vmem:[#allocation2 + $0x80] sm:$0xff]  ;;  %1721 = vmatpush3.bf16.msra.mxu0 %v1775_v34 }
  0x4a   : > { %795 = vrot.lane.b32.xlu0 %v1657_v19, %s1808_s24  ;;  %v895_v19 = vld [vmem:[#allocation2 + $0x181] sm:$0xff]  ;;  %1736 = vmatpush3.bf16.msra.mxu1 %v1775_v34 }
  0x4b   : > { %v1677_v20 = vpack.c.bf16 %v895_v19, %v895_v19  ;;  %1722 = vmatprep.subr.bf16.mxu0 %v1777_v39  ;;  %1734 = vmatprep.subr.bf16.mxu1 %v1777_v39 }
  0x4d   : > { %805 = vrot.lane.b32.xlu1 %v1662_v23, %s1808_s24  ;;  %v1686_v23 = vpack.c.bf16 %v962_v21, %v962_v21  ;;  %1723 = vmatpush3.bf16.msra.mxu0 %v1777_v39 }
  0x4e   : > { %803 = vrot.lane.b32.xlu0 %v1661_v31, %s1808_s24  ;;  %v1162_v31 = vunpack.c.h.bf16 %v1604_v26  ;;  %1737 = vmatpush3.bf16.msra.mxu1 %v1777_v39 }
  0x51   : > { %858 = vrot.lane.b32.xlu1 %v1664_v33, %s1809_s25  ;;  %v1608_v33 = vld [vmem:[%s1859_s19 + $0x108] ss:$8 sps:$4 sm:$0xff]  }
  0x52   : > { %856 = vrot.lane.b32.xlu0 %v1663_v37, %s1809_s25  ;;  %v1166_v38 = vunpack.c.h.bf16 %v1608_v33 }
  0x55   : > { %866 = vrot.lane.b32.xlu1 %v1668_v0, %s1809_s25 }
  0x56   : > { %864 = vrot.lane.b32.xlu0 %v1667_v41, %s1809_s25 }
  0x59   : > { %862 = vrot.lane.b32.xlu1 %v1666_v44, %s1809_s25  ;;  %v1165_v44 = vunpack.c.l.bf16 %v1608_v33 }
  0x5a   : > { %860 = vrot.lane.b32.xlu0 %v1665_v50, %s1809_s25 }
  0x5d   : > { %870 = vrot.lane.b32.xlu1 %v1670_v53, %s1809_s25 }
  0x5e   : > { %868 = vrot.lane.b32.xlu0 %v1669_v57, %s1809_s25 }
  0x61   : > { %923 = vrot.lane.b32.xlu1 %v1672_v58, %s1810_s26 }
  0x62   : > { %921 = vrot.lane.b32.xlu0 %v1671_v63, %s1810_s26 }
  0x65   : > { %931 = vrot.lane.b32.xlu1 %v1676_v1, %s1810_s26 }
  0x66   : > { %929 = vrot.lane.b32.xlu0 %v1675_v4, %s1810_s26 }
  0x69   : > { %927 = vrot.lane.b32.xlu1 %v1674_v6, %s1810_s26 }
  0x6a   : > { %925 = vrot.lane.b32.xlu0 %v1673_v12, %s1810_s26 }
  0x6d   : > { %935 = vrot.lane.b32.xlu1 %v1678_v17, %s1810_s26 }
  0x6e   : > { %933 = vrot.lane.b32.xlu0 %v1677_v20, %s1810_s26 }
  0x71   : > { %989 = vrot.lane.b32.xlu1 %v2056_v5, %s1811_s27  ;;  %v1028_v5 = vld [vmem:[#allocation2 + $0x110] sm:$0xff] }
  0x72   : > { %987 = vrot.lane.b32.xlu0 %v2058_v9, %s1811_s27  ;;  %v1694_v9 = vpack.c.bf16 %v1028_v5, %v1028_v5 }
  0x75   : > { %997 = vrot.lane.b32.xlu1 %v2060_v10, %s1811_s27 }
  0x76   : > { %995 = vrot.lane.b32.xlu0 %v2062_v11, %s1811_s27 }
  0x79   : > { %993 = vrot.lane.b32.xlu1 %v2068_v13, %s1811_s27  ;;  %v1606_v13 = vld [vmem:[%s1859_s19 + $0xf8] ss:$8 sps:$4 sm:$0xff]  }
  0x7a   : > { %991 = vrot.lane.b32.xlu0 %v2070_v14, %s1811_s27 }
  0x7d   : > { %1001 = vrot.lane.b32.xlu1 %v1686_v23, %s1811_s27 }
  0x7e   : > { %999 = vrot.lane.b32.xlu0 %v2072_v18, %s1811_s27  ;;  %v1164_v18 = vunpack.c.h.bf16 %v1606_v13 }
  0x81   : > { %1055 = vrot.lane.b32.xlu1 %v1903_v48, %s1812_s28 }
  0x82   : > { %1053 = vrot.lane.b32.xlu0 %v1899_v46, %s1812_s28  ;;  %v1602_v46 = vld [vmem:[%s1859_s19 + $0xd8] ss:$8 sps:$4 sm:$0xff]   ;;  %s192_s19 = scalar_lea.vmem %s2250_s3, %s1630_s16 }
  0x85   : > { %1063 = vrot.lane.b32.xlu1 %v1910_v52, %s1812_s28  ;;  %v1093_v52 = vld [vmem:[#allocation2 + $0x81] sm:$0xff] }
  0x86   : > { %1061 = vrot.lane.b32.xlu0 %v1897_v42, %s1812_s28 }
  0x89   : > { %1059 = vrot.lane.b32.xlu1 %v1895_v40, %s1812_s28 }
  0x8a   : > { %1057 = vrot.lane.b32.xlu0 %v1901_v47, %s1812_s28  ;;  %v1160_v47 = vunpack.c.h.bf16 %v1602_v46 }
  0x8d   : > { %1067 = vrot.lane.b32.xlu1 %v1694_v9, %s1812_s28 }
  0x8e   : > { %1065 = vrot.lane.b32.xlu0 %v1908_v51, %s1812_s28 }
  0x91   : > { %1120 = vrot.lane.b32.xlu1 %v2004_v43, %s1813_s29  ;;  %v1159_v43 = vunpack.c.l.bf16 %v1602_v46 }
  0x92   : > { %1118 = vrot.lane.b32.xlu0 %v1927_v61, %s1813_s29  ;;  %v1702_v61 = vpack.c.bf16 %v1093_v52, %v1093_v52 }
  0x93   : > { %v670_v10 = vpop.permute.xlu1 %669 }
  0x94   : > { %v662_v11 = vpop.permute.xlu0 %661  ;;  %690 = vst.msk [vmem:[#allocation3 + $0x10] sm:$0xf] %vm685_vm3, %v670_v10 }
  0x95   : > { %686 = vst.msk [vmem:[#allocation3] sm:$0xf] %vm685_vm3, %v662_v11  ;;  %1128 = vrot.lane.b32.xlu1 %v2018_v60, %s1813_s29  ;;  %v1781_v60 = vld [vmem:[%s2248_s1] ss:$0 sm:$0xff] }
  0x96   : > { %1126 = vrot.lane.b32.xlu0 %v1979_v15, %s1813_s29  ;;  %v1168_v14 = vmul.f32 %v1781_v60, %v1160_v47  ;;  %v1167_v15 = vmul.f32 %v1781_v60, %v1159_v43  ;;  %v1172_v30 = vmul.f32 %v1781_v60, %v1164_v18  ;;  %v1170_v0 = vmul.f32 %v1781_v60, %v1162_v31 }
  0x97   : > { %v672_v42 = vpop.permute.xlu1 %671  ;;  %v1174_v49 = vmul.f32 %v1781_v60, %v1166_v38  ;;  %v1173_v56 = vmul.f32 %v1781_v60, %v1165_v44 }
  0x98   : > { %v664_v40 = vpop.permute.xlu0 %663  ;;  %691 = vst.msk [vmem:[#allocation3 + $0x14] sm:$0xf] %vm685_vm3, %v672_v42  ;;  %v1704_v29 = vpack.c.bf16 %v1168_v14, %v1168_v14  ;;  %v1708_v37 = vpack.c.bf16 %v1172_v30, %v1172_v30  ;;  %v1706_v45 = vpack.c.bf16 %v1170_v0, %v1170_v0 }
  0x99   : > { %687 = vst.msk [vmem:[#allocation3 + $0x4] sm:$0xf] %vm685_vm3, %v664_v40  ;;  %1124 = vrot.lane.b32.xlu1 %v1981_v16, %s1813_s29  ;;  %v1163_v16 = vunpack.c.l.bf16 %v1606_v13  ;;  %v1710_v57 = vpack.c.bf16 %v1174_v49, %v1174_v49  ;;  %v1709_v62 = vpack.c.bf16 %v1173_v56, %v1173_v56 }
  0x9a   : > { %1122 = vrot.lane.b32.xlu0 %v1988_v22, %s1813_s29  ;;  %v1703_v22 = vpack.c.bf16 %v1167_v15, %v1167_v15 }
  0x9b   : > { %v668_v48 = vpop.permute.xlu1 %667  ;;  %v1171_v36 = vmul.f32 %v1781_v60, %v1163_v16 }
  0x9c   : > { %v666_v51 = vpop.permute.xlu0 %665  ;;  %689 = vst.msk [vmem:[#allocation3 + $0xc] sm:$0xf] %vm685_vm3, %v668_v48 }
  0x9d   : > { %688 = vst.msk [vmem:[#allocation3 + $0x8] sm:$0xf] %vm685_vm3, %v666_v51  ;;  %1132 = vrot.lane.b32.xlu1 %v1702_v61, %s1813_s29  ;;  %v1707_v41 = vpack.c.bf16 %v1171_v36, %v1171_v36 }
  0x9e   : > { %1130 = vrot.lane.b32.xlu0 %v2013_v55, %s1813_s29  ;;  %v1169_v55 = vmul.f32 %v1781_v60, %v1161_v35 }
  0x9f   : > { %v676_v24 = vpop.permute.xlu1 %675 }
  0xa0   : > { %v674_v25 = vpop.permute.xlu0 %673  ;;  %693 = vst.msk [vmem:[#allocation3 + $0x1c] sm:$0xf] %vm685_vm3, %v676_v24  ;;  %v1705_v54 = vpack.c.bf16 %v1169_v55, %v1169_v55 }
  0xa1   : > { %692 = vst.msk [vmem:[#allocation3 + $0x18] sm:$0xf] %vm685_vm3, %v674_v25  ;;  %1201 = vrot.lane.b32.xlu1 %v1704_v29, %s1814_s9 }
  0xa2   : > { %1199 = vrot.lane.b32.xlu0 %v1703_v22, %s1814_s9 }
  0xa3   : > { %v729_v32 = vpop.permute.xlu1 %728 }
  0xa4   : > { %752 = vst.msk [vmem:[#allocation3 + $0x4] sm:$0xf] %vm750_vm4, %v729_v32  ;;  %v727_v50 = vpop.permute.xlu0 %726 }
  0xa5   : > { %1209 = vrot.lane.b32.xlu1 %v1708_v37, %s1814_s9  ;;  %751 = vst.msk [vmem:[#allocation3] sm:$0xf] %vm750_vm4, %v727_v50 }
  0xa6   : > { %1207 = vrot.lane.b32.xlu0 %v1707_v41, %s1814_s9 }
  0xa7   : > { %v737_v53 = vpop.permute.xlu1 %736 }
  0xa8   : > { %756 = vst.msk [vmem:[#allocation3 + $0x14] sm:$0xf] %vm750_vm4, %v737_v53  ;;  %v735_v58 = vpop.permute.xlu0 %734 }
  0xa9   : > { %1205 = vrot.lane.b32.xlu1 %v1706_v45, %s1814_s9  ;;  %755 = vst.msk [vmem:[#allocation3 + $0x10] sm:$0xf] %vm750_vm4, %v735_v58 }
  0xaa   : > { %1203 = vrot.lane.b32.xlu0 %v1705_v54, %s1814_s9 }
  0xab   : > { %v733_v59 = vpop.permute.xlu1 %732 }
  0xac   : > { %754 = vst.msk [vmem:[#allocation3 + $0xc] sm:$0xf] %vm750_vm4, %v733_v59  ;;  %v731_v63 = vpop.permute.xlu0 %730 }
  0xad   : > { %1213 = vrot.lane.b32.xlu1 %v1710_v57, %s1814_s9  ;;  %753 = vst.msk [vmem:[#allocation3 + $0x8] sm:$0xf] %vm750_vm4, %v731_v63 }
  0xae   : > { %1211 = vrot.lane.b32.xlu0 %v1709_v62, %s1814_s9 }
  0xaf   : > { %v741_v1 = vpop.permute.xlu1 %740 }
  0xb0   : > { %758 = vst.msk [vmem:[#allocation3 + $0x1c] sm:$0xf] %vm750_vm4, %v741_v1  ;;  %v739_v2 = vpop.permute.xlu0 %738 }
  0xb1   : > { %757 = vst.msk [vmem:[#allocation3 + $0x18] sm:$0xf] %vm750_vm4, %v739_v2 }
  0xb3   : > { %v794_v3 = vpop.permute.xlu1 %793 }
  0xb4   : > { %817 = vst.msk [vmem:[#allocation3 + $0x4] sm:$0xf] %vm815_vm6, %v794_v3  ;;  %v792_v4 = vpop.permute.xlu0 %791 }
  0xb5   : > { %816 = vst.msk [vmem:[#allocation3] sm:$0xf] %vm815_vm6, %v792_v4 }
  0xb7   : > { %v802_v6 = vpop.permute.xlu1 %801 }
  0xb8   : > { %821 = vst.msk [vmem:[#allocation3 + $0x14] sm:$0xf] %vm815_vm6, %v802_v6  ;;  %v800_v7 = vpop.permute.xlu0 %799 }
  0xb9   : > { %820 = vst.msk [vmem:[#allocation3 + $0x10] sm:$0xf] %vm815_vm6, %v800_v7 }
  0xbb   : > { %v798_v8 = vpop.permute.xlu1 %797 }
  0xbc   : > { %819 = vst.msk [vmem:[#allocation3 + $0xc] sm:$0xf] %vm815_vm6, %v798_v8  ;;  %v796_v12 = vpop.permute.xlu0 %795 }
  0xbd   : > { %818 = vst.msk [vmem:[#allocation3 + $0x8] sm:$0xf] %vm815_vm6, %v796_v12 }
  0xbf   : > { %v806_v17 = vpop.permute.xlu1 %805 }
  0xc0   : > { %823 = vst.msk [vmem:[#allocation3 + $0x1c] sm:$0xf] %vm815_vm6, %v806_v17  ;;  %v804_v19 = vpop.permute.xlu0 %803 }
  0xc1   : > { %822 = vst.msk [vmem:[#allocation3 + $0x18] sm:$0xf] %vm815_vm6, %v804_v19 }
  0xc3   : > { %v859_v20 = vpop.permute.xlu1 %858 }
  0xc4   : > { %882 = vst.msk [vmem:[#allocation3 + $0x4] sm:$0xf] %vm880_vm7, %v859_v20  ;;  %v857_v21 = vpop.permute.xlu0 %856 }
  0xc5   : > { %881 = vst.msk [vmem:[#allocation3] sm:$0xf] %vm880_vm7, %v857_v21 }
  0xc7   : > { %v867_v23 = vpop.permute.xlu1 %866 }
  0xc8   : > { %886 = vst.msk [vmem:[#allocation3 + $0x14] sm:$0xf] %vm880_vm7, %v867_v23  ;;  %v865_v5 = vpop.permute.xlu0 %864 }
  0xc9   : > { %885 = vst.msk [vmem:[#allocation3 + $0x10] sm:$0xf] %vm880_vm7, %v865_v5 }
  0xcb   : > { %v863_v9 = vpop.permute.xlu1 %862 }
  0xcc   : > { %884 = vst.msk [vmem:[#allocation3 + $0xc] sm:$0xf] %vm880_vm7, %v863_v9  ;;  %v861_v10 = vpop.permute.xlu0 %860 }
  0xcd   : > { %883 = vst.msk [vmem:[#allocation3 + $0x8] sm:$0xf] %vm880_vm7, %v861_v10 }
  0xcf   : > { %v871_v11 = vpop.permute.xlu1 %870 }
  0xd0   : > { %888 = vst.msk [vmem:[#allocation3 + $0x1c] sm:$0xf] %vm880_vm7, %v871_v11  ;;  %v869_v42 = vpop.permute.xlu0 %868 }
  0xd1   : > { %887 = vst.msk [vmem:[#allocation3 + $0x18] sm:$0xf] %vm880_vm7, %v869_v42 }
  0xd3   : > { %v924_v40 = vpop.permute.xlu1 %923 }
  0xd4   : > { %947 = vst.msk [vmem:[#allocation3 + $0x4] sm:$0xf] %vm945_vm8, %v924_v40  ;;  %v922_v46 = vpop.permute.xlu0 %921 }
  0xd5   : > { %946 = vst.msk [vmem:[#allocation3] sm:$0xf] %vm945_vm8, %v922_v46 }
  0xd7   : > { %v932_v47 = vpop.permute.xlu1 %931 }
  0xd8   : > { %951 = vst.msk [vmem:[#allocation3 + $0x14] sm:$0xf] %vm945_vm8, %v932_v47  ;;  %v930_v48 = vpop.permute.xlu0 %929 }
  0xd9   : > { %950 = vst.msk [vmem:[#allocation3 + $0x10] sm:$0xf] %vm945_vm8, %v930_v48 }
  0xdb   : > { %v928_v51 = vpop.permute.xlu1 %927 }
  0xdc   : > { %949 = vst.msk [vmem:[#allocation3 + $0xc] sm:$0xf] %vm945_vm8, %v928_v51  ;;  %v926_v52 = vpop.permute.xlu0 %925 }
  0xdd   : > { %948 = vst.msk [vmem:[#allocation3 + $0x8] sm:$0xf] %vm945_vm8, %v926_v52 }
  0xdf   : > { %v936_v13 = vpop.permute.xlu1 %935 }
  0xe0   : > { %953 = vst.msk [vmem:[#allocation3 + $0x1c] sm:$0xf] %vm945_vm8, %v936_v13  ;;  %v934_v43 = vpop.permute.xlu0 %933 }
  0xe1   : > { %952 = vst.msk [vmem:[#allocation3 + $0x18] sm:$0xf] %vm945_vm8, %v934_v43 }
  0xe3   : > { %v990_v61 = vpop.permute.xlu1 %989 }
  0xe4   : > { %1013 = vst.msk [vmem:[#allocation3 + $0x4] sm:$0xf] %vm1011_vm9, %v990_v61  ;;  %v988_v60 = vpop.permute.xlu0 %987 }
  0xe5   : > { %1012 = vst.msk [vmem:[#allocation3] sm:$0xf] %vm1011_vm9, %v988_v60 }
  0xe7   : > { %v998_v14 = vpop.permute.xlu1 %997 }
  0xe8   : > { %1017 = vst.msk [vmem:[#allocation3 + $0x14] sm:$0xf] %vm1011_vm9, %v998_v14  ;;  %v996_v18 = vpop.permute.xlu0 %995 }
  0xe9   : > { %1016 = vst.msk [vmem:[#allocation3 + $0x10] sm:$0xf] %vm1011_vm9, %v996_v18 }
  0xeb   : > { %v994_v24 = vpop.permute.xlu1 %993 }
  0xec   : > { %1015 = vst.msk [vmem:[#allocation3 + $0xc] sm:$0xf] %vm1011_vm9, %v994_v24  ;;  %v992_v25 = vpop.permute.xlu0 %991 }
  0xed   : > { %1014 = vst.msk [vmem:[#allocation3 + $0x8] sm:$0xf] %vm1011_vm9, %v992_v25 }
  0xef   : > { %v1002_v26 = vpop.permute.xlu1 %1001 }
  0xf0   : > { %1019 = vst.msk [vmem:[#allocation3 + $0x1c] sm:$0xf] %vm1011_vm9, %v1002_v26  ;;  %v1000_v27 = vpop.permute.xlu0 %999 }
  0xf1   : > { %1018 = vst.msk [vmem:[#allocation3 + $0x18] sm:$0xf] %vm1011_vm9, %v1000_v27 }
  0xf3   : > { %v1056_v15 = vpop.permute.xlu1 %1055 }
  0xf4   : > { %1079 = vst.msk [vmem:[#allocation3 + $0x4] sm:$0xf] %vm1077_vm10, %v1056_v15  ;;  %v1054_v16 = vpop.permute.xlu0 %1053 }
  0xf5   : > { %1078 = vst.msk [vmem:[#allocation3] sm:$0xf] %vm1077_vm10, %v1054_v16 }
  0xf7   : > { %v1064_v28 = vpop.permute.xlu1 %1063 }
  0xf8   : > { %1083 = vst.msk [vmem:[#allocation3 + $0x14] sm:$0xf] %vm1077_vm10, %v1064_v28  ;;  %v1062_v29 = vpop.permute.xlu0 %1061 }
  0xf9   : > { %1082 = vst.msk [vmem:[#allocation3 + $0x10] sm:$0xf] %vm1077_vm10, %v1062_v29 }
  0xfb   : > { %v1060_v30 = vpop.permute.xlu1 %1059 }
  0xfc   : > { %1081 = vst.msk [vmem:[#allocation3 + $0xc] sm:$0xf] %vm1077_vm10, %v1060_v30  ;;  %v1058_v31 = vpop.permute.xlu0 %1057 }
  0xfd   : > { %1080 = vst.msk [vmem:[#allocation3 + $0x8] sm:$0xf] %vm1077_vm10, %v1058_v31 }
  0xff   : > { %v1068_v32 = vpop.permute.xlu1 %1067 }
 0x100   : > { %1085 = vst.msk [vmem:[#allocation3 + $0x1c] sm:$0xf] %vm1077_vm10, %v1068_v32  ;;  %v1066_v33 = vpop.permute.xlu0 %1065 }
 0x101   : > { %1084 = vst.msk [vmem:[#allocation3 + $0x18] sm:$0xf] %vm1077_vm10, %v1066_v33 }
 0x103   : > { %v1121_v34 = vpop.permute.xlu1 %1120 }
 0x104   : > { %1144 = vst.msk [vmem:[#allocation3 + $0x4] sm:$0xf] %vm1142_vm11, %v1121_v34  ;;  %v1119_v35 = vpop.permute.xlu0 %1118 }
 0x105   : > { %1143 = vst.msk [vmem:[#allocation3] sm:$0xf] %vm1142_vm11, %v1119_v35 }
 0x107   : > { %v1129_v22 = vpop.permute.xlu1 %1128 }
 0x108   : > { %1148 = vst.msk [vmem:[#allocation3 + $0x14] sm:$0xf] %vm1142_vm11, %v1129_v22  ;;  %v1127_v36 = vpop.permute.xlu0 %1126 }
 0x109   : > { %1147 = vst.msk [vmem:[#allocation3 + $0x10] sm:$0xf] %vm1142_vm11, %v1127_v36 }
 0x10b   : > { %v1125_v37 = vpop.permute.xlu1 %1124 }
 0x10c   : > { %1146 = vst.msk [vmem:[#allocation3 + $0xc] sm:$0xf] %vm1142_vm11, %v1125_v37  ;;  %v1123_v0 = vpop.permute.xlu0 %1122 }
 0x10d   : > { %1145 = vst.msk [vmem:[#allocation3 + $0x8] sm:$0xf] %vm1142_vm11, %v1123_v0 }
 0x10f   : > { %v1133_v38 = vpop.permute.xlu1 %1132 }
 0x110   : > { %1150 = vst.msk [vmem:[#allocation3 + $0x1c] sm:$0xf] %vm1142_vm11, %v1133_v38  ;;  %v1131_v39 = vpop.permute.xlu0 %1130 }
 0x111   : > { %1149 = vst.msk [vmem:[#allocation3 + $0x18] sm:$0xf] %vm1142_vm11, %v1131_v39 }
 0x113   : > { %v1202_v41 = vpop.permute.xlu1 %1201 }
 0x114   : > { %1225 = vst.msk [vmem:[#allocation3 + $0x4] sm:$0xf] %vm1223_vm12, %v1202_v41  ;;  %v1200_v55 = vpop.permute.xlu0 %1199 }
 0x115   : > { %1224 = vst.msk [vmem:[#allocation3] sm:$0xf] %vm1223_vm12, %v1200_v55 }
 0x117   : > { %v1210_v44 = vpop.permute.xlu1 %1209 }
 0x118   : > { %1229 = vst.msk [vmem:[#allocation3 + $0x14] sm:$0xf] %vm1223_vm12, %v1210_v44  ;;  %v1208_v45 = vpop.permute.xlu0 %1207 }
 0x119   : > { %1228 = vst.msk [vmem:[#allocation3 + $0x10] sm:$0xf] %vm1223_vm12, %v1208_v45 }
 0x11b   : > { %v1206_v49 = vpop.permute.xlu1 %1205 }
 0x11c   : > { %1227 = vst.msk [vmem:[#allocation3 + $0xc] sm:$0xf] %vm1223_vm12, %v1206_v49  ;;  %v1204_v50 = vpop.permute.xlu0 %1203  ;;  %v1776_v53 = vld [vmem:[#allocation3] sm:$0xff]  }
 0x11d   : > { %1226 = vst.msk [vmem:[#allocation3 + $0x8] sm:$0xf] %vm1223_vm12, %v1204_v50  ;;  %1724 = vmatprep.mubr.msk.bf16.mxu0 %vm1280_vm13, %v1776_v53 }
 0x11f   : > { %v1214_v54 = vpop.permute.xlu1 %1213 }
 0x120   : > { %1231 = vst.msk [vmem:[#allocation3 + $0x1c] sm:$0xf] %vm1223_vm12, %v1214_v54  ;;  %v1212_v56 = vpop.permute.xlu0 %1211  ;;  %v1778_v57 = vld [vmem:[#allocation3 + $0x10] sm:$0xff]  }
 0x121   : > { %1230 = vst.msk [vmem:[#allocation3 + $0x18] sm:$0xf] %vm1223_vm12, %v1212_v56  ;;  %1728 = vmatprep.mubr.msk.bf16.mxu1 %vm1280_vm13, %v1778_v57 }
 0x124   : > { %v1779_v58 = vld [vmem:[#allocation3 + $0x8] sm:$0xff]  }
 0x125   : > { %1725 = vmatmul.mubr.msk.bf16.vlgmr.msra.gmra.mxu0 %vm1280_vm13, %v1779_v58 }
 0x128   : > { %v1780_v59 = vld [vmem:[#allocation3 + $0x18] sm:$0xff]  }
 0x129   : > { %1729 = vmatmul.mubr.msk.bf16.vlgmr.msra.gmra.mxu1 %vm1280_vm13, %v1780_v59 }
 0x1e5   : > { %v1726_v62 = vpop.f32.mrf.mxu0 }
 0x1e6   : > { %1365 = vst.msk [vmem:[%s192_s19 + $0x10] sm:$0xff] %vm1362_vm14, %v1726_v62 }
 0x1e7   : > { %v1331_v63 = vpop.f32.mrf.mxu0 }
 0x1e8   : > { %1363 = vst.msk [vmem:[%s192_s19] sm:$0xff] %vm1362_vm14, %v1331_v63 }
 0x1e9   : > { %v1727_v1 = vpop.f32.mrf.mxu0  ;;  %v1730_v2 = vpop.f32.mrf.mxu1 }
 0x1ea   : > { %1366 = vst.msk [vmem:[%s192_s19 + $0x18] sm:$0xff] %vm1362_vm14, %v1727_v1  ;;  %1369 = vst.msk [vmem:[%s192_s19 + $0x30] sm:$0xff] %vm1362_vm14, %v1730_v2 }
 0x1eb   : > { %v1334_v3 = vpop.f32.mrf.mxu0  ;;  %v1347_v4 = vpop.f32.mrf.mxu1 }
 0x1ec   : > { %1364 = vst.msk [vmem:[%s192_s19 + $0x8] sm:$0xff] %vm1362_vm14, %v1334_v3  ;;  %1367 = vst.msk [vmem:[%s192_s19 + $0x20] sm:$0xff] %vm1362_vm14, %v1347_v4 }
 0x1ed   : > { %v1731_v6 = vpop.f32.mrf.mxu1 }
 0x1ee   : > { %1370 = vst.msk [vmem:[%s192_s19 + $0x38] sm:$0xff] %vm1362_vm14, %v1731_v6 }
 0x1ef   : > { %v1350_v7 = vpop.f32.mrf.mxu1 }
 0x1f0   : > { %1368 = vst.msk [vmem:[%s192_s19 + $0x28] sm:$0xff] %vm1362_vm14, %v1350_v7 }
 0x1f1 PF: > { %s13_s14 = sadd.s32 1, %s1804_s14   ;;  %s2251_s12 = smov %s1800_s13 }
 0x1f2   : > { %p10_p5 = scmp.ge.s32.totalorder %s13_s14, 4   ;;  %s2252_s13 = smov %s2254_s15 }
 0x1f4   :  { %12 = sbr.rel (!%p10_p5) target bundleno = 2 (0x2), region = 71 }

</bundles_post_ra>
